<compile_context>
chip_gen: v7x
topology: tpu7x:2x2x1
jax: 0.10.0
libtpu: 0.0.40
codegen_flags: <defaults>
</compile_context>

<pallas_src>
import functools

import jax
import jax.numpy as jnp
from jax.experimental import pallas as pl
from jax.experimental.pallas import tpu as pltpu

EPS = 1e-5


def relu_conv1x1_bn_kernel(x_ref, w_ref, gamma_ref, beta_ref, o_ref, *, inv_true_m):
    # x_ref:     (Cin, M)      f32   pre-ReLU input, M = N*H*W along lanes
    # w_ref:     (Co_blk, Cin) f32   1x1-conv weight block (Cout-major, no transpose needed)
    # gamma_ref: (Co_blk, 1)   f32   BN scale
    # beta_ref:  (Co_blk, 1)   f32   BN shift
    # o_ref:     (Co_blk, M)   f32   output block
    x = jnp.maximum(x_ref[...], 0.0).astype(jnp.bfloat16)   # ReLU in f32 (exact), cast for MXU
    w = w_ref[...].astype(jnp.bfloat16)
    z = jnp.dot(w, x, preferred_element_type=jnp.float32)    # 1x1 conv == matmul, f32 acc

    # BatchNorm2d, training mode: biased per-channel stats over the M = N*H*W positions.
    s1 = jnp.sum(z, axis=-1, keepdims=True)                  # (Co_blk, 1)
    s2 = jnp.sum(z * z, axis=-1, keepdims=True)              # (Co_blk, 1)
    mean = s1 * inv_true_m
    var = jnp.maximum(s2 * inv_true_m - mean * mean, 0.0)    # one-pass var, clamped (cancellation)
    inv = jax.lax.rsqrt(var + EPS)

    # Fold BN affine into one per-channel scale/shift -> one mul + one add on the slab.
    scale = inv * gamma_ref[...]                              # (Co_blk, 1)
    shift = beta_ref[...] - mean * scale                      # (Co_blk, 1)
    o_ref[...] = (z * scale + shift).astype(o_ref.dtype)


def relu_conv_bn(x_nchw, conv_w, gamma, beta):
    """x_nchw: (N, C, H, W) f32; conv_w: (Cout, Cin, 1, 1); gamma/beta: (Cout,)"""
    N, C, H, W = x_nchw.shape
    Cout, Cin = conv_w.shape[0], conv_w.shape[1]
    M = N * H * W

    if N == 1:
        x_cm = x_nchw.reshape(C, M)                    # free (row-major view)
    else:
        # TODO(synk): N>1 needs a real transpose to channel-major; the module spec is N=1.
        x_cm = jnp.transpose(x_nchw, (1, 0, 2, 3)).reshape(C, M)

    w = conv_w.reshape(Cout, Cin)                      # free
    g = gamma.astype(jnp.float32).reshape(Cout, 1)
    b = beta.astype(jnp.float32).reshape(Cout, 1)

    # Split Cout over (up to) 2 blocks so both v7x TensorCores participate; keep blocks
    # sublane-aligned (multiple of 8).  On single-TC chips it's a cheap 2-iteration loop.
    n_blk = 2 if (Cout % 2 == 0 and (Cout // 2) % 8 == 0) else 1
    co_blk = Cout // n_blk

    kernel = functools.partial(relu_conv1x1_bn_kernel, inv_true_m=1.0 / M)

    out_cm = pl.pallas_call(
        kernel,
        out_shape=jax.ShapeDtypeStruct((Cout, M), x_nchw.dtype),
        grid=(n_blk,),
        in_specs=[
            pl.BlockSpec((C, M), lambda i: (0, 0)),           # full input for every block
            pl.BlockSpec((co_blk, Cin), lambda i: (i, 0)),    # weight rows for this Cout block
            pl.BlockSpec((co_blk, 1), lambda i: (i, 0)),
            pl.BlockSpec((co_blk, 1), lambda i: (i, 0)),
        ],
        out_specs=pl.BlockSpec((co_blk, M), lambda i: (i, 0)),
        compiler_params=pltpu.CompilerParams(dimension_semantics=("parallel",)),
    )(x_cm, w, g, b)

    if N == 1:
        return out_cm.reshape(1, Cout, H, W)           # free
    return jnp.transpose(out_cm.reshape(Cout, N, H, W), (1, 0, 2, 3))


def reference(x_nchw, conv_w, gamma, beta, matmul_dtype=jnp.float32):
    # Pure-JAX reference (matmul precision configurable).  BN forward only; PyTorch's
    # running_mean/running_var state update is not part of the returned value.
    x = jnp.maximum(x_nchw, 0.0)
    N, C, H, W = x.shape
    Cout = conv_w.shape[0]
    xr = jnp.transpose(x, (0, 2, 3, 1)).reshape(-1, C).astype(matmul_dtype)
    wt = conv_w.reshape(Cout, C).T.astype(matmul_dtype)
    z = jnp.dot(xr, wt, preferred_element_type=jnp.float32)
    mean = z.mean(axis=0, keepdims=True)
    var = ((z - mean) ** 2).mean(axis=0, keepdims=True)
    y = (z - mean) / jnp.sqrt(var + EPS) * gamma.reshape(1, -1) + beta.reshape(1, -1)
    return jnp.transpose(y.reshape(N, H, W, Cout), (0, 3, 1, 2))


if __name__ == "__main__":
    key = jax.random.PRNGKey(0)
    k_x, k_w, k_g, k_b = jax.random.split(key, 4)

    N, C, H, W = 1, 336, 14, 14            # shapes implied by the module
    x = jax.random.normal(k_x, (N, C, H, W), dtype=jnp.float32)
    conv_w = jax.random.normal(k_w, (C, C, 1, 1), dtype=jnp.float32) * 0.05
    gamma = 1.0 + 0.1 * jax.random.normal(k_g, (C,), dtype=jnp.float32)
    beta = 0.1 * jax.random.normal(k_b, (C,), dtype=jnp.float32)

    out = relu_conv_bn(x, conv_w, gamma, beta)
    out = jax.block_until_ready(out)
    assert out.shape == (N, C, H, W), out.shape

    # Check vs. a reference at the same matmul precision (bf16 in, f32 acc).
    ref_bf16 = reference(x, conv_w, gamma, beta, jnp.bfloat16)
    assert jnp.allclose(out, ref_bf16, atol=1e-2, rtol=1e-2), float(
        jnp.max(jnp.abs(out - ref_bf16)))

    # Looser check vs. the full-f32 reference (bf16 matmul rounding only).
    ref_f32 = reference(x, conv_w, gamma, beta, jnp.float32)
    assert jnp.allclose(out, ref_f32, atol=5e-2, rtol=5e-2), float(
        jnp.max(jnp.abs(out - ref_f32)))

    print("KERNEL_OK")
</pallas_src>

<mosaic_0001>
module attributes {stable_mosaic.version = 11 : i64} {
  func.func @relu_conv1x1_bn_kernel(%arg0: i32, %arg1: memref<336x196xf32, #tpu.memory_space<vmem>>, %arg2: memref<168x336xf32, #tpu.memory_space<vmem>>, %arg3: memref<168x1xf32, #tpu.memory_space<vmem>>, %arg4: memref<168x1xf32, #tpu.memory_space<vmem>>, %arg5: memref<168x196xf32, #tpu.memory_space<vmem>>) attributes {dimension_semantics = [#tpu.dimension_semantics<parallel>], iteration_bounds = array<i64: 2>, scalar_prefetch = 0 : i64, scratch_operands = 0 : i64, tpu.core_type = #tpu.core_type<tc>, window_params = [{pipeline_mode = #tpu.pipeline_mode<synchronous>, transform_indices = @transform_0, window_bounds = array<i64: 336, 196>}, {transform_indices = @transform_1, window_bounds = array<i64: 168, 336>}, {transform_indices = @transform_2, window_bounds = array<i64: 168, 1>}, {transform_indices = @transform_3, window_bounds = array<i64: 168, 1>}, {transform_indices = @transform_4, window_bounds = array<i64: 168, 196>}]} {
    %c0 = arith.constant 0 : index
    %c0_0 = arith.constant 0 : index
    %0 = vector.load %arg1[%c0, %c0_0] : memref<336x196xf32, #tpu.memory_space<vmem>>, vector<336x196xf32>
    %cst = arith.constant 0.000000e+00 : f32
    %1 = vector.broadcast %cst : f32 to vector<336x196xf32>
    %2 = arith.maximumf %0, %1 : vector<336x196xf32>
    %3 = arith.truncf %2 : vector<336x196xf32> to vector<336x196xbf16>
    %c0_1 = arith.constant 0 : index
    %c0_2 = arith.constant 0 : index
    %4 = vector.load %arg2[%c0_1, %c0_2] : memref<168x336xf32, #tpu.memory_space<vmem>>, vector<168x336xf32>
    %5 = arith.truncf %4 : vector<168x336xf32> to vector<168x336xbf16>
    %cst_3 = arith.constant dense<0.000000e+00> : vector<168x196xf32>
    %6 = tpu.matmul %5, %3, %cst_3 {dimension_numbers = #tpu.dot_dimension_numbers<[1], [0], [0], [1], [0, 0, 1, 1], [], []>} : vector<168x336xbf16>, vector<336x196xbf16>, vector<168x196xf32> -> vector<168x196xf32>
    %cst_4 = arith.constant dense<0.000000e+00> : vector<168xf32>
    %7 = vector.multi_reduction <add>, %6, %cst_4 [1] : vector<168x196xf32> to vector<168xf32>
    %8 = vector.shape_cast %7 : vector<168xf32> to vector<168x1xf32>
    %9 = arith.mulf %6, %6 : vector<168x196xf32>
    %cst_5 = arith.constant dense<0.000000e+00> : vector<168xf32>
    %10 = vector.multi_reduction <add>, %9, %cst_5 [1] : vector<168x196xf32> to vector<168xf32>
    %11 = vector.shape_cast %10 : vector<168xf32> to vector<168x1xf32>
    %cst_6 = arith.constant 0.00510204071 : f32
    %12 = vector.broadcast %cst_6 : f32 to vector<168x1xf32>
    %13 = arith.mulf %8, %12 : vector<168x1xf32>
    %cst_7 = arith.constant 0.00510204071 : f32
    %14 = vector.broadcast %cst_7 : f32 to vector<168x1xf32>
    %15 = arith.mulf %11, %14 : vector<168x1xf32>
    %16 = arith.mulf %13, %13 : vector<168x1xf32>
    %17 = arith.subf %15, %16 : vector<168x1xf32>
    %cst_8 = arith.constant 0.000000e+00 : f32
    %18 = vector.broadcast %cst_8 : f32 to vector<168x1xf32>
    %19 = arith.maximumf %17, %18 : vector<168x1xf32>
    %cst_9 = arith.constant 9.99999974E-6 : f32
    %20 = vector.broadcast %cst_9 : f32 to vector<168x1xf32>
    %21 = arith.addf %19, %20 : vector<168x1xf32>
    %22 = math.rsqrt %21 : vector<168x1xf32>
    %c0_10 = arith.constant 0 : index
    %c0_11 = arith.constant 0 : index
    %23 = vector.load %arg3[%c0_10, %c0_11] : memref<168x1xf32, #tpu.memory_space<vmem>>, vector<168x1xf32>
    %24 = arith.mulf %22, %23 : vector<168x1xf32>
    %c0_12 = arith.constant 0 : index
    %c0_13 = arith.constant 0 : index
    %25 = vector.load %arg4[%c0_12, %c0_13] : memref<168x1xf32, #tpu.memory_space<vmem>>, vector<168x1xf32>
    %26 = arith.mulf %13, %24 : vector<168x1xf32>
    %27 = arith.subf %25, %26 : vector<168x1xf32>
    %28 = vector.broadcast %24 : vector<168x1xf32> to vector<168x196xf32>
    %29 = arith.mulf %6, %28 : vector<168x196xf32>
    %30 = vector.broadcast %27 : vector<168x1xf32> to vector<168x196xf32>
    %31 = arith.addf %29, %30 : vector<168x196xf32>
    %c0_14 = arith.constant 0 : index
    %c0_15 = arith.constant 0 : index
    %32 = vector.load %arg5[%c0_14, %c0_15] : memref<168x196xf32, #tpu.memory_space<vmem>>, vector<168x196xf32>
    tpu.vector_store %arg5[%c0_14, %c0_15], %31 {strides = array<i32>} : memref<168x196xf32, #tpu.memory_space<vmem>>, vector<168x196xf32>,
    return
  }
  func.func @transform_0(%arg0: i32) -> (i32, i32) {
    %c0_i32 = arith.constant 0 : i32
    %c0_i32_0 = arith.constant 0 : i32
    %c0_i32_1 = arith.constant 0 : i32
    return %c0_i32, %c0_i32_0 : i32, i32
  }
  func.func @transform_1(%arg0: i32) -> (i32, i32) {
    %c0_i32 = arith.constant 0 : i32
    %c0_i32_0 = arith.constant 0 : i32
    return %arg0, %c0_i32 : i32, i32
  }
  func.func @transform_2(%arg0: i32) -> (i32, i32) {
    %c0_i32 = arith.constant 0 : i32
    %c0_i32_0 = arith.constant 0 : i32
    return %arg0, %c0_i32 : i32, i32
  }
  func.func @transform_3(%arg0: i32) -> (i32, i32) {
    %c0_i32 = arith.constant 0 : i32
    %c0_i32_0 = arith.constant 0 : i32
    return %arg0, %c0_i32 : i32, i32
  }
  func.func @transform_4(%arg0: i32) -> (i32, i32) {
    %c0_i32 = arith.constant 0 : i32
    %c0_i32_0 = arith.constant 0 : i32
    return %arg0, %c0_i32 : i32, i32
  }
}

</mosaic_0001>

<bundles_post_ra>
// kernel: tpu_custom_call.1
= control target key start
LH: loop header
LB: loop body
LE: loop exit
PB: predicated region body
PF: predicated region fallthrough
CT: control target
= control target key end

     0   :  { %s1908_s15 = smov 0   ;;  %s2886_s0 = inlined_call_operand.vmem [shape: f32[336,196], index: 0, kind: input, shape index: {}]   ;;  %s2887_s1 = inlined_call_operand.vmem [shape: f32[336,336], index: 1, kind: input, shape index: {}]   ;;  %s2888_s2 = inlined_call_operand.vmem [shape: f32[336,1], index: 2, kind: input, shape index: {}]   ;;  %s2889_s3 = inlined_call_operand.vmem [shape: f32[336,1], index: 3, kind: input, shape index: {}]   ;;  %s2890_s4 = inlined_call_operand.vmem [shape: f32[336,196], index: 4, kind: output, shape index: {}]  }
   0x1 LB: > { %s1754_s16 = sadd.s32 4294967295, %s1880_s15   ;;  %p1758_p0 = scmp.ge.s32.totalorder %s1880_s15, 1  ;;  %s1880_s15 = sphi %s1908_s15, %s14_s15  }
   0x2   : > { %p186_p1 = scmp.lt.s32.totalorder %s1880_s15, 3 }
   0x4   : > { %p187_p2 = pnand %p1758_p0, %p186_p1 }
   0x6   : > { %190 = sbr.rel (%p187_p2) target bundleno = 694 (0x2b6), region = 36 }
   0xd   : > { %v252_v0 = vld [vmem:[%s2886_s0 + $0x8] sm:$0xff]  ;;  %v254_v1 = vld [vmem:[%s2886_s0 + $0x18] sm:$0xff]  ;;  %v251_v2 = vld [vmem:[%s2886_s0] sm:$0xff]  ;;  %v1882_v9 = vmov 0   ;;  %s1987_s11 = smul.u32 21, %s1754_s16  ;;  %vm557_vm0 = vcmask 654336  }
   0xe   : > { %v336_v3 = vmax.f32 %v252_v0, 0.0  ;;  %v338_v4 = vmax.f32 %v254_v1, 0.0  ;;  %v253_v5 = vld [vmem:[%s2886_s0 + $0x10] sm:$0xff]  ;;  %v335_v6 = vmax.f32 %v251_v2, 0.0  ;;  %v256_v7 = vld [vmem:[%s2886_s0 + $0x28] sm:$0xff]  ;;  %v258_v8 = vld [vmem:[%s2886_s0 + $0x38] sm:$0xff]  ;;  %764 = vmatprep.mubr.bf16.mxu0 %v1882_v9  ;;  %1830 = vset.pattern.permute.xlu0 %v1882_v9 }
   0xf   : > { %v337_v10 = vmax.f32 %v253_v5, 0.0  ;;  %v340_v11 = vmax.f32 %v256_v7, 0.0  ;;  %v342_v12 = vmax.f32 %v258_v8, 0.0  ;;  %v255_v13 = vld [vmem:[%s2886_s0 + $0x20] sm:$0xff]  ;;  %v257_v14 = vld [vmem:[%s2886_s0 + $0x30] sm:$0xff]  ;;  %v260_v15 = vld [vmem:[%s2886_s0 + $0x48] sm:$0xff]  ;;  %1831 = vset.pattern.permute.xlu1 %v1882_v9 }
  0x10   : > { %v420_v16 = vpack.c.bf16 %v338_v4, %v336_v3  ;;  %v339_v17 = vmax.f32 %v255_v13, 0.0  ;;  %v341_v18 = vmax.f32 %v257_v14, 0.0  ;;  %v262_v19 = vld [vmem:[%s2886_s0 + $0x58] sm:$0xff]  ;;  %v344_v20 = vmax.f32 %v260_v15, 0.0  ;;  %v259_v21 = vld [vmem:[%s2886_s0 + $0x40] sm:$0xff]  ;;  %v261_v22 = vld [vmem:[%s2886_s0 + $0x50] sm:$0xff] }
  0x11   : > { %v419_v23 = vpack.c.bf16 %v337_v10, %v335_v6  ;;  %v422_v24 = vpack.c.bf16 %v342_v12, %v340_v11  ;;  %v346_v25 = vmax.f32 %v262_v19, 0.0  ;;  %v264_v26 = vld [vmem:[%s2886_s0 + $0x68] sm:$0xff]  ;;  %v266_v27 = vld [vmem:[%s2886_s0 + $0x78] sm:$0xff]  ;;  %v343_v29 = vmax.f32 %v259_v21, 0.0  ;;  %v263_v34 = vld [vmem:[%s2886_s0 + $0x60] sm:$0xff]  ;;  %p225_p3 = scmp.lt.s32.totalorder %s1987_s11, 41 }
  0x12   : > { %591 = vmatprep.subr.bf16.mxu1 %v420_v16  ;;  %v421_v28 = vpack.c.bf16 %v341_v18, %v339_v17  ;;  %v345_v30 = vmax.f32 %v261_v22, 0.0  ;;  %v348_v32 = vmax.f32 %v264_v26, 0.0  ;;  %v350_v33 = vmax.f32 %v266_v27, 0.0  ;;  %v265_v35 = vld [vmem:[%s2886_s0 + $0x70] sm:$0xff]  ;;  %v268_v36 = vld [vmem:[%s2886_s0 + $0x88] sm:$0xff]  ;;  %v270_v37 = vld [vmem:[%s2886_s0 + $0x98] sm:$0xff] }
  0x13   : > { %592 = vmatpush1.bf16.msra.mxu1 %v419_v23  ;;  %v424_v31 = vpack.c.bf16 %v346_v25, %v344_v20  ;;  %v347_v39 = vmax.f32 %v263_v34, 0.0  ;;  %v349_v40 = vmax.f32 %v265_v35, 0.0  ;;  %v352_v42 = vmax.f32 %v268_v36, 0.0  ;;  %v267_v44 = vld [vmem:[%s2886_s0 + $0x80] sm:$0xff]  ;;  %v269_v45 = vld [vmem:[%s2886_s0 + $0x90] sm:$0xff]  ;;  %v272_v46 = vld [vmem:[%s2886_s0 + $0xa8] sm:$0xff] }
  0x14   : > { %593 = vmatprep.subr.bf16.mxu1 %v422_v24  ;;  %v423_v38 = vpack.c.bf16 %v345_v30, %v343_v29  ;;  %v426_v41 = vpack.c.bf16 %v350_v33, %v348_v32  ;;  %v354_v43 = vmax.f32 %v270_v37, 0.0  ;;  %v274_v47 = vld [vmem:[%s2886_s0 + $0xb8] sm:$0xff]  ;;  %v351_v49 = vmax.f32 %v267_v44, 0.0  ;;  %v271_v51 = vld [vmem:[%s2886_s0 + $0xa0] sm:$0xff]  ;;  %v273_v52 = vld [vmem:[%s2886_s0 + $0xb0] sm:$0xff]  ;;  %s2928_s11 = smov (!%p225_p3, %s1987_s11), 41 }
  0x15   : > { %v425_v48 = vpack.c.bf16 %v349_v40, %v347_v39  ;;  %v353_v50 = vmax.f32 %v269_v45, 0.0  ;;  %v316_v53 = vld [vmem:[%s2886_s0 + $0x208] sm:$0xff]  ;;  %v356_v55 = vmax.f32 %v272_v46, 0.0  ;;  %v358_v56 = vmax.f32 %v274_v47, 0.0  ;;  %v318_v57 = vld [vmem:[%s2886_s0 + $0x218] sm:$0xff]  ;;  %v315_v58 = vld [vmem:[%s2886_s0 + $0x200] sm:$0xff] }
  0x16   : > { %v428_v54 = vpack.c.bf16 %v354_v43, %v352_v42  ;;  %v317_v59 = vld [vmem:[%s2886_s0 + $0x210] sm:$0xff]  ;;  %v276_v60 = vld [vmem:[%s2886_s0 + $0xc8] sm:$0xff]  ;;  %v278_v61 = vld [vmem:[%s2886_s0 + $0xd8] sm:$0xff]  ;;  %v355_v62 = vmax.f32 %v271_v51, 0.0  ;;  %v357_v63 = vmax.f32 %v273_v52, 0.0  ;;  %v400_v0 = vmax.f32 %v316_v53, 0.0 }
  0x17   : > { %594 = vmatpush1.bf16.msra.mxu1 %v421_v28  ;;  %v402_v1 = vmax.f32 %v318_v57, 0.0  ;;  %v320_v2 = vld [vmem:[%s2886_s0 + $0x228] sm:$0xff]  ;;  %v322_v3 = vld [vmem:[%s2886_s0 + $0x238] sm:$0xff]  ;;  %v427_v4 = vpack.c.bf16 %v353_v50, %v351_v49  ;;  %v275_v5 = vld [vmem:[%s2886_s0 + $0xc0] sm:$0xff]  ;;  %v399_v6 = vmax.f32 %v315_v58, 0.0  ;;  %v401_v7 = vmax.f32 %v317_v59, 0.0 }
  0x18   : > { %595 = vmatprep.subr.bf16.mxu1 %v424_v31  ;;  %v319_v8 = vld [vmem:[%s2886_s0 + $0x220] sm:$0xff]  ;;  %v321_v10 = vld [vmem:[%s2886_s0 + $0x230] sm:$0xff]  ;;  %v430_v11 = vpack.c.bf16 %v358_v56, %v356_v55  ;;  %v360_v12 = vmax.f32 %v276_v60, 0.0  ;;  %v362_v13 = vmax.f32 %v278_v61, 0.0  ;;  %v280_v15 = vld [vmem:[%s2886_s0 + $0xe8] sm:$0xff]  ;;  %v404_v19 = vmax.f32 %v320_v2, 0.0 }
  0x19   : > { %v277_v14 = vld [vmem:[%s2886_s0 + $0xd0] sm:$0xff]  ;;  %v282_v16 = vld [vmem:[%s2886_s0 + $0xf8] sm:$0xff]  ;;  %v452_v17 = vpack.c.bf16 %v402_v1, %v400_v0  ;;  %v451_v18 = vpack.c.bf16 %v401_v7, %v399_v6  ;;  %v406_v20 = vmax.f32 %v322_v3, 0.0  ;;  %v324_v21 = vld [vmem:[%s2886_s0 + $0x248] sm:$0xff]  ;;  %v429_v23 = vpack.c.bf16 %v357_v63, %v355_v62  ;;  %s1820_s21 = smul.u32 24, %s2928_s11  ;;  %s1777_s29 = sshll.u32 %s2928_s11, 4 }
  0x1a   : > { %v326_v22 = vld [vmem:[%s2886_s0 + $0x258] sm:$0xff]  ;;  %v359_v24 = vmax.f32 %v275_v5, 0.0  ;;  %v403_v25 = vmax.f32 %v319_v8, 0.0  ;;  %v405_v26 = vmax.f32 %v321_v10, 0.0  ;;  %v323_v27 = vld [vmem:[%s2886_s0 + $0x240] sm:$0xff]  ;;  %v325_v28 = vld [vmem:[%s2886_s0 + $0x250] sm:$0xff]  ;;  %v432_v36 = vpack.c.bf16 %v362_v13, %v360_v12  ;;  %s2778_s6 = scalar_lea.vmem %s2890_s4, %s1777_s29 }
  0x1b   : > { %596 = vmatpush1.bf16.msra.mxu1 %v423_v38  ;;  %732 = vmatprep.subr.bf16.mxu0 %v452_v17  ;;  %v361_v29 = vmax.f32 %v277_v14, 0.0  ;;  %v364_v30 = vmax.f32 %v280_v15, 0.0  ;;  %v366_v31 = vmax.f32 %v282_v16, 0.0  ;;  %v279_v32 = vld [vmem:[%s2886_s0 + $0xe0] sm:$0xff]  ;;  %v281_v33 = vld [vmem:[%s2886_s0 + $0xf0] sm:$0xff]  ;;  %v284_v34 = vld [vmem:[%s2886_s0 + $0x108] sm:$0xff]  ;;  %v454_v35 = vpack.c.bf16 %v406_v20, %v404_v19  ;;  %s2107_s17 = scalar_lea.vmem %s2887_s1, %s1820_s21 }
  0x1c   : > { %597 = vmatprep.subr.bf16.mxu1 %v426_v41  ;;  %733 = vmatpush1.bf16.msra.mxu0 %v451_v18  ;;  %v453_v37 = vpack.c.bf16 %v405_v26, %v403_v25  ;;  %v408_v38 = vmax.f32 %v324_v21, 0.0  ;;  %v410_v39 = vmax.f32 %v326_v22, 0.0  ;;  %v328_v40 = vld [vmem:[%s2886_s0 + $0x268] sm:$0xff]  ;;  %v330_v41 = vld [vmem:[%s2886_s0 + $0x278] sm:$0xff]  ;;  %v407_v43 = vmax.f32 %v323_v27, 0.0  ;;  %v327_v45 = vld [vmem:[%s2886_s0 + $0x260] sm:$0xff] }
  0x1d   : > { %v286_v42 = vld [vmem:[%s2886_s0 + $0x118] sm:$0xff]  ;;  %734 = vmatprep.subr.bf16.mxu0 %v454_v35  ;;  %v409_v44 = vmax.f32 %v325_v28, 0.0  ;;  %v329_v46 = vld [vmem:[%s2886_s0 + $0x270] sm:$0xff]  ;;  %v363_v47 = vmax.f32 %v279_v32, 0.0  ;;  %v368_v49 = vmax.f32 %v284_v34, 0.0  ;;  %v431_v51 = vpack.c.bf16 %v361_v29, %v359_v24  ;;  %v283_v52 = vld [vmem:[%s2886_s0 + $0x100] sm:$0xff] }
  0x1e   : > { %v456_v50 = vpack.c.bf16 %v410_v39, %v408_v38  ;;  %v414_v55 = vmax.f32 %v330_v41, 0.0  ;;  %v332_v56 = vld [vmem:[%s2886_s0 + $0x288] sm:$0xff]  ;;  %v334_v57 = vld [vmem:[%s2886_s0 + $0x298] sm:$0xff]  ;;  %v434_v58 = vpack.c.bf16 %v366_v31, %v364_v30  ;;  %v370_v59 = vmax.f32 %v286_v42, 0.0  ;;  %v285_v60 = vld [vmem:[%s2886_s0 + $0x110] sm:$0xff] }
  0x1f   : > { %598 = vmatpush1.bf16.msra.mxu1 %v425_v48  ;;  %v365_v48 = vmax.f32 %v281_v33, 0.0  ;;  %v455_v53 = vpack.c.bf16 %v409_v44, %v407_v43  ;;  %v411_v61 = vmax.f32 %v327_v45, 0.0  ;;  %v413_v62 = vmax.f32 %v329_v46, 0.0  ;;  %v331_v63 = vld [vmem:[%s2886_s0 + $0x280] sm:$0xff]  ;;  %v333_v0 = vld [vmem:[%s2886_s0 + $0x290] sm:$0xff]  ;;  %v288_v1 = vld [vmem:[%s2886_s0 + $0x128] sm:$0xff] }
  0x20   : > { %599 = vmatprep.subr.bf16.mxu1 %v428_v54  ;;  %735 = vmatpush1.bf16.msra.mxu0 %v453_v37  ;;  %v412_v54 = vmax.f32 %v328_v40, 0.0  ;;  %v290_v2 = vld [vmem:[%s2886_s0 + $0x138] sm:$0xff]  ;;  %v367_v5 = vmax.f32 %v283_v52, 0.0  ;;  %v416_v6 = vmax.f32 %v332_v56, 0.0  ;;  %v418_v7 = vmax.f32 %v334_v57, 0.0  ;;  %v462_v8 = vld [vmem:[%s2107_s17 + $0x8] sm:$0xff] }
  0x21   : > { %736 = vmatprep.subr.bf16.mxu0 %v456_v50  ;;  %v465_v10 = vld [vmem:[%s2107_s17 + $0x20] sm:$0xff]  ;;  %v457_v12 = vpack.c.bf16 %v413_v62, %v411_v61  ;;  %v415_v13 = vmax.f32 %v331_v63, 0.0  ;;  %v417_v14 = vmax.f32 %v333_v0, 0.0  ;;  %v436_v15 = vpack.c.bf16 %v370_v59, %v368_v49  ;;  %v289_v19 = vld [vmem:[%s2886_s0 + $0x130] sm:$0xff]  ;;  %v292_v21 = vld [vmem:[%s2886_s0 + $0x148] sm:$0xff] }
  0x22   : > { %v458_v3 = vpack.c.bf16 %v414_v55, %v412_v54  ;;  %v372_v16 = vmax.f32 %v288_v1, 0.0  ;;  %v374_v17 = vmax.f32 %v290_v2, 0.0  ;;  %v287_v18 = vld [vmem:[%s2886_s0 + $0x120] sm:$0xff]  ;;  %v460_v20 = vpack.c.bf16 %v418_v7, %v416_v6  ;;  %v294_v22 = vld [vmem:[%s2886_s0 + $0x158] sm:$0xff]  ;;  %v463_v28 = vld [vmem:[%s2107_s17 + $0x10] sm:$0xff] }
  0x23   : > { %600 = vmatpush1.bf16.msra.mxu1 %v427_v4  ;;  %v433_v4 = vpack.c.bf16 %v365_v48, %v363_v47  ;;  %v371_v25 = vmax.f32 %v287_v18, 0.0  ;;  %v373_v26 = vmax.f32 %v289_v19, 0.0  ;;  %v459_v27 = vpack.c.bf16 %v417_v14, %v415_v13  ;;  %v466_v29 = vld [vmem:[%s2107_s17 + $0x28] sm:$0xff]  ;;  %v291_v33 = vld [vmem:[%s2886_s0 + $0x140] sm:$0xff]  ;;  %v293_v34 = vld [vmem:[%s2886_s0 + $0x150] sm:$0xff] }
  0x24   : > { %601 = vmatprep.subr.bf16.mxu1 %v430_v11  ;;  %v369_v11 = vmax.f32 %v285_v60, 0.0  ;;  %737 = vmatpush1.bf16.msra.mxu0 %v455_v53  ;;  %v438_v30 = vpack.c.bf16 %v374_v17, %v372_v16  ;;  %v376_v31 = vmax.f32 %v292_v21, 0.0  ;;  %v378_v32 = vmax.f32 %v294_v22, 0.0  ;;  %v296_v35 = vld [vmem:[%s2886_s0 + $0x168] sm:$0xff]  ;;  %v295_v44 = vld [vmem:[%s2886_s0 + $0x160] sm:$0xff]  ;;  %v297_v45 = vld [vmem:[%s2886_s0 + $0x170] sm:$0xff] }
  0x25   : > { %738 = vmatprep.subr.bf16.mxu0 %v458_v3  ;;  %v526_v37 = vpack.c.bf16 %v466_v29, %v463_v28  ;;  %v437_v38 = vpack.c.bf16 %v373_v26, %v371_v25  ;;  %v375_v39 = vmax.f32 %v291_v33, 0.0  ;;  %v377_v40 = vmax.f32 %v293_v34, 0.0  ;;  %v300_v46 = vld [vmem:[%s2886_s0 + $0x188] sm:$0xff]  ;;  %v302_v47 = vld [vmem:[%s2886_s0 + $0x198] sm:$0xff]  ;;  %v299_v56 = vld [vmem:[%s2886_s0 + $0x180] sm:$0xff] }
  0x26   : > { %v435_v24 = vpack.c.bf16 %v369_v11, %v367_v5  ;;  %v440_v41 = vpack.c.bf16 %v378_v32, %v376_v31  ;;  %v380_v42 = vmax.f32 %v296_v35, 0.0  ;;  %v379_v49 = vmax.f32 %v295_v44, 0.0  ;;  %v472_v52 = vld [vmem:[%s2107_s17 + $0x58] sm:$0xff]  ;;  %v301_v57 = vld [vmem:[%s2886_s0 + $0x190] sm:$0xff]  ;;  %v303_v3 = vld [vmem:[%s2886_s0 + $0x1a0] sm:$0xff] }
  0x27   : > { %602 = vmatpush1.bf16.msra.mxu1 %v429_v23  ;;  %v525_v23 = vpack.c.bf16 %v465_v10, %v462_v8  ;;  %v439_v48 = vpack.c.bf16 %v377_v40, %v375_v39  ;;  %v381_v50 = vmax.f32 %v297_v45, 0.0  ;;  %v384_v54 = vmax.f32 %v300_v46, 0.0  ;;  %v306_v59 = vld [vmem:[%s2886_s0 + $0x1b8] sm:$0xff]  ;;  %v308_v5 = vld [vmem:[%s2886_s0 + $0x1c8] sm:$0xff]  ;;  %v475_v11 = vld [vmem:[%s2107_s17 + $0x70] sm:$0xff] }
  0x28   : > { %603 = vmatprep.subr.bf16.mxu1 %v432_v36  ;;  %739 = vmatpush1.bf16.msra.mxu0 %v457_v12  ;;  %v298_v36 = vld [vmem:[%s2886_s0 + $0x178] sm:$0xff]  ;;  %v386_v55 = vmax.f32 %v302_v47, 0.0  ;;  %v383_v62 = vmax.f32 %v299_v56, 0.0  ;;  %v385_v63 = vmax.f32 %v301_v57, 0.0  ;;  %v390_v2 = vmax.f32 %v306_v59, 0.0  ;;  %v478_v12 = vld [vmem:[%s2107_s17 + $0x88] sm:$0xff] }
  0x29   : > { %740 = vmatprep.subr.bf16.mxu0 %v460_v20  ;;  %623 = vmatprep.mubr.bf16.mxu1 %v525_v23  ;;  %v382_v43 = vmax.f32 %v298_v36, 0.0  ;;  %v441_v61 = vpack.c.bf16 %v381_v50, %v379_v49  ;;  %v310_v6 = vld [vmem:[%s2886_s0 + $0x1d8] sm:$0xff]  ;;  %v387_v8 = vmax.f32 %v303_v3, 0.0  ;;  %v392_v14 = vmax.f32 %v308_v5, 0.0  ;;  %v307_v16 = vld [vmem:[%s2886_s0 + $0x1c0] sm:$0xff]  ;;  %v309_v17 = vld [vmem:[%s2886_s0 + $0x1d0] sm:$0xff] }
  0x2a   : > { %v444_v0 = vpack.c.bf16 %v386_v55, %v384_v54  ;;  %v443_v7 = vpack.c.bf16 %v385_v63, %v383_v62  ;;  %v312_v18 = vld [vmem:[%s2886_s0 + $0x1e8] sm:$0xff]  ;;  %v314_v19 = vld [vmem:[%s2886_s0 + $0x1f8] sm:$0xff]  ;;  %v532_v20 = vpack.c.bf16 %v478_v12, %v475_v11  ;;  %v391_v22 = vmax.f32 %v307_v16, 0.0  ;;  %v313_v28 = vld [vmem:[%s2886_s0 + $0x1f0] sm:$0xff] }
  0x2b   : > { %604 = vmatpush1.bf16.msra.mxu1 %v431_v51  ;;  %v469_v51 = vld [vmem:[%s2107_s17 + $0x40] sm:$0xff]  ;;  %v442_v53 = vpack.c.bf16 %v382_v43, %v380_v42  ;;  %v393_v23 = vmax.f32 %v309_v17, 0.0  ;;  %v396_v25 = vmax.f32 %v312_v18, 0.0  ;;  %v398_v26 = vmax.f32 %v314_v19, 0.0  ;;  %v484_v33 = vld [vmem:[%s2107_s17 + $0xb8] sm:$0xff]  ;;  %v471_v40 = vld [vmem:[%s2107_s17 + $0x50] sm:$0xff] }
  0x2c   : > { %605 = vmatprep.subr.bf16.mxu1 %v434_v58  ;;  %741 = vmatpush1.bf16.msra.mxu0 %v459_v27  ;;  %v304_v58 = vld [vmem:[%s2886_s0 + $0x1a8] sm:$0xff]  ;;  %v529_v60 = vpack.c.bf16 %v472_v52, %v469_v51  ;;  %v311_v27 = vld [vmem:[%s2886_s0 + $0x1e0] sm:$0xff]  ;;  %v397_v31 = vmax.f32 %v313_v28, 0.0  ;;  %v468_v39 = vld [vmem:[%s2107_s17 + $0x38] sm:$0xff]  ;;  %vm873_vm1 = vcmask 556032  }
  0x2d   : > { %v388_v1 = vmax.f32 %v304_v58, 0.0  ;;  %v447_v29 = vpack.c.bf16 %v393_v23, %v391_v22  ;;  %v481_v32 = vld [vmem:[%s2107_s17 + $0xa0] sm:$0xff]  ;;  %v450_v34 = vpack.c.bf16 %v398_v26, %v396_v25  ;;  %v528_v42 = vpack.c.bf16 %v471_v40, %v468_v39  ;;  %v487_v43 = vld [vmem:[%s2107_s17 + $0xd0] sm:$0xff]  ;;  %v490_v44 = vld [vmem:[%s2107_s17 + $0xe8] sm:$0xff] }
  0x2e   : > { %v535_v35 = vpack.c.bf16 %v484_v33, %v481_v32  ;;  %v538_v45 = vpack.c.bf16 %v490_v44, %v487_v43  ;;  %v467_v46 = vld [vmem:[%s2107_s17 + $0x30] sm:$0xff]  ;;  %v470_v47 = vld [vmem:[%s2107_s17 + $0x48] sm:$0xff]  ;;  %v477_v49 = vld [vmem:[%s2107_s17 + $0x80] sm:$0xff] }
  0x2f   : > { %606 = vmatpush1.bf16.msra.mxu1 %v433_v4  ;;  %1764 = vmatmul.mubr.msk.bf16.vlgmr.msra.gmra.mrb[0].mxu0 %vm557_vm0, %v526_v37  ;;  %v305_v4 = vld [vmem:[%s2886_s0 + $0x1b0] sm:$0xff]  ;;  %v446_v13 = vpack.c.bf16 %v390_v2, %v388_v1  ;;  %v461_v37 = vld [vmem:[%s2107_s17] sm:$0xff]  ;;  %v527_v50 = vpack.c.bf16 %v470_v47, %v467_v46  ;;  %v476_v56 = vld [vmem:[%s2107_s17 + $0x78] sm:$0xff] }
  0x30   : > { %607 = vmatprep.subr.bf16.mxu1 %v436_v15  ;;  %774 = vmatprep.mubr.bf16.mxu0 %v1882_v9  ;;  %v389_v10 = vmax.f32 %v305_v4, 0.0  ;;  %v394_v15 = vmax.f32 %v310_v6, 0.0  ;;  %v493_v52 = vld [vmem:[%s2107_s17 + $0x100] sm:$0xff]  ;;  %v480_v57 = vld [vmem:[%s2107_s17 + $0x98] sm:$0xff]  ;;  %v483_v58 = vld [vmem:[%s2107_s17 + $0xb0] sm:$0xff] }
  0x31   : > { %v473_v55 = vld [vmem:[%s2107_s17 + $0x60] sm:$0xff]  ;;  %v502_v62 = vld [vmem:[%s2107_s17 + $0x148] sm:$0xff]  ;;  %v488_v11 = vld [vmem:[%s2107_s17 + $0xd8] sm:$0xff] }
  0x32   : > { %v445_v21 = vpack.c.bf16 %v389_v10, %v387_v8  ;;  %v530_v59 = vpack.c.bf16 %v476_v56, %v473_v55  ;;  %v482_v1 = vld [vmem:[%s2107_s17 + $0xa8] sm:$0xff]  ;;  %v489_v3 = vld [vmem:[%s2107_s17 + $0xe0] sm:$0xff]  ;;  %v492_v12 = vld [vmem:[%s2107_s17 + $0xf8] sm:$0xff] }
  0x33   : > { %608 = vmatpush1.bf16.msra.mxu1 %v435_v24  ;;  %v448_v24 = vpack.c.bf16 %v394_v15, %v392_v14  ;;  %v486_v2 = vld [vmem:[%s2107_s17 + $0xc8] sm:$0xff]  ;;  %v505_v6 = vld [vmem:[%s2107_s17 + $0x160] sm:$0xff]  ;;  %v511_v16 = vld [vmem:[%s2107_s17 + $0x190] sm:$0xff] }
  0x34   : > { %609 = vmatprep.subr.bf16.mxu1 %v438_v30  ;;  %v395_v30 = vmax.f32 %v311_v27, 0.0  ;;  %v537_v5 = vpack.c.bf16 %v489_v3, %v486_v2  ;;  %v485_v10 = vld [vmem:[%s2107_s17 + $0xc0] sm:$0xff]  ;;  %v514_v17 = vld [vmem:[%s2107_s17 + $0x1a8] sm:$0xff]  ;;  %v491_v19 = vld [vmem:[%s2107_s17 + $0xf0] sm:$0xff] }
  0x35   : > { %v536_v14 = vpack.c.bf16 %v488_v11, %v485_v10  ;;  %v550_v18 = vpack.c.bf16 %v514_v17, %v511_v16  ;;  %v501_v22 = vld [vmem:[%s2107_s17 + $0x140] sm:$0xff]  ;;  %v520_v26 = vld [vmem:[%s2107_s17 + $0x1d8] sm:$0xff]  ;;  %v519_v44 = vld [vmem:[%s2107_s17 + $0x1d0] sm:$0xff] }
  0x36   : > { %v449_v36 = vpack.c.bf16 %v397_v31, %v395_v30  ;;  %v517_v25 = vld [vmem:[%s2107_s17 + $0x1c0] sm:$0xff]  ;;  %v504_v30 = vld [vmem:[%s2107_s17 + $0x158] sm:$0xff]  ;;  %v507_v31 = vld [vmem:[%s2107_s17 + $0x170] sm:$0xff] }
  0x37   : > { %610 = vmatpush1.bf16.msra.mxu1 %v437_v38  ;;  %1765 = vmatmul.mubr.msk.bf16.gmra.mrb[4].mxu0 %vm557_vm0, %v529_v60  ;;  %v464_v38 = vld [vmem:[%s2107_s17 + $0x18] sm:$0xff]  ;;  %v534_v60 = vpack.c.bf16 %v483_v58, %v480_v57  ;;  %v553_v27 = vpack.c.bf16 %v520_v26, %v517_v25  ;;  %v497_v28 = vld [vmem:[%s2107_s17 + $0x120] sm:$0xff]  ;;  %v546_v33 = vpack.c.bf16 %v507_v31, %v504_v30  ;;  %v515_v47 = vld [vmem:[%s2107_s17 + $0x1b0] sm:$0xff] }
  0x38   : > { %611 = vmatprep.subr.bf16.mxu1 %v440_v41  ;;  %784 = vmatprep.mubr.bf16.mxu0 %v1882_v9  ;;  %v524_v41 = vpack.c.bf16 %v464_v38, %v461_v37  ;;  %v506_v37 = vld [vmem:[%s2107_s17 + $0x168] sm:$0xff]  ;;  %v513_v39 = vld [vmem:[%s2107_s17 + $0x1a0] sm:$0xff]  ;;  %v516_v43 = vld [vmem:[%s2107_s17 + $0x1b8] sm:$0xff] }
  0x39   : > { %v510_v38 = vld [vmem:[%s2107_s17 + $0x188] sm:$0xff]  ;;  %v552_v46 = vpack.c.bf16 %v519_v44, %v516_v43 }
  0x3b   : > { %612 = vmatpush1.bf16.msra.mxu1 %v439_v48  ;;  %v474_v48 = vld [vmem:[%s2107_s17 + $0x68] sm:$0xff] }
  0x3c   : > { %613 = vmatprep.subr.bf16.mxu1 %v442_v53  ;;  %v531_v51 = vpack.c.bf16 %v477_v49, %v474_v48  ;;  %v496_v53 = vld [vmem:[%s2107_s17 + $0x118] sm:$0xff]  ;;  %v518_v48 = vld [vmem:[%s2107_s17 + $0x1c8] sm:$0xff] }
  0x3d   : > { %v541_v54 = vpack.c.bf16 %v496_v53, %v493_v52  ;;  %v522_v49 = vld [vmem:[%s2107_s17 + $0x1e8] sm:$0xff]  ;;  %v521_v52 = vld [vmem:[%s2107_s17 + $0x1e0] sm:$0xff] }
  0x3e   : > { %v554_v53 = vpack.c.bf16 %v521_v52, %v521_v52 }
  0x3f   : > { %614 = vmatpush1.bf16.msra.mxu1 %v441_v61  ;;  %1766 = vmatmul.mubr.msk.bf16.gmra.mrb[8].mxu0 %vm557_vm0, %v532_v20  ;;  %v499_v61 = vld [vmem:[%s2107_s17 + $0x130] sm:$0xff]  ;;  %v494_v20 = vld [vmem:[%s2107_s17 + $0x108] sm:$0xff] }
  0x40   : > { %615 = vmatprep.subr.bf16.mxu1 %v444_v0  ;;  %794 = vmatprep.mubr.bf16.mxu0 %v1882_v9  ;;  %v544_v63 = vpack.c.bf16 %v502_v62, %v499_v61  ;;  %v479_v0 = vld [vmem:[%s2107_s17 + $0x90] sm:$0xff]  ;;  %v539_v23 = vpack.c.bf16 %v494_v20, %v491_v19 }
  0x41   : > { %v533_v4 = vpack.c.bf16 %v482_v1, %v479_v0 }
  0x43   : > { %616 = vmatpush1.bf16.msra.mxu1 %v443_v7  ;;  %v508_v7 = vld [vmem:[%s2107_s17 + $0x178] sm:$0xff] }
  0x44   : > { %617 = vmatprep.subr.bf16.mxu1 %v446_v13  ;;  %v547_v8 = vpack.c.bf16 %v508_v7, %v505_v6  ;;  %v495_v13 = vld [vmem:[%s2107_s17 + $0x110] sm:$0xff] }
  0x45   : > { %v540_v15 = vpack.c.bf16 %v495_v13, %v492_v12 }
  0x47   : > { %618 = vmatpush1.bf16.msra.mxu1 %v445_v21  ;;  %1767 = vmatmul.mubr.msk.bf16.gmra.mrb[12].mxu0 %vm557_vm0, %v535_v35  ;;  %v498_v21 = vld [vmem:[%s2107_s17 + $0x128] sm:$0xff] }
  0x48   : > { %619 = vmatprep.subr.bf16.mxu1 %v448_v24  ;;  %804 = vmatprep.mubr.bf16.mxu0 %v1882_v9  ;;  %v543_v24 = vpack.c.bf16 %v501_v22, %v498_v21 }
  0x4b   : > { %620 = vmatpush1.bf16.msra.mxu1 %v447_v29  ;;  %v500_v29 = vld [vmem:[%s2107_s17 + $0x138] sm:$0xff] }
  0x4c   : > { %621 = vmatprep.subr.bf16.mxu1 %v450_v34  ;;  %v542_v32 = vpack.c.bf16 %v500_v29, %v497_v28  ;;  %v523_v34 = vld [vmem:[%s2107_s17 + $0x1f0] sm:$0xff] }
  0x4d   : > { %v556_v35 = vpack.c.bf16 %v523_v34, %v523_v34 }
  0x4f   : > { %622 = vmatpush1.bf16.msra.mxu1 %v449_v36  ;;  %1768 = vmatmul.mubr.msk.bf16.gmra.mrb[16].mxu0 %vm557_vm0, %v538_v45  ;;  %v503_v36 = vld [vmem:[%s2107_s17 + $0x150] sm:$0xff] }
  0x50   : > { %814 = vmatprep.mubr.bf16.mxu0 %v1882_v9  ;;  %v545_v40 = vpack.c.bf16 %v506_v37, %v503_v36 }
  0x52   : > { %624 = vmatmul.mubr.bf16.vlgmr.msra.gmra.mrb[0].mxu1 %v524_v41  ;;  %v549_v41 = vpack.c.bf16 %v513_v39, %v510_v38 }
  0x53   : > { %633 = vmatprep.mubr.bf16.mxu1 %v528_v42  ;;  %v512_v42 = vld [vmem:[%s2107_s17 + $0x198] sm:$0xff] }
  0x57   : > { %1769 = vmatmul.mubr.msk.bf16.gmra.mrb[20].mxu0 %vm557_vm0, %v541_v54 }
  0x58   : > { %824 = vmatprep.mubr.bf16.mxu0 %v1882_v9 }
  0x5a   : > { %634 = vmatmul.mubr.bf16.gmra.mrb[4].mxu1 %v527_v50  ;;  %v551_v50 = vpack.c.bf16 %v518_v48, %v515_v47 }
  0x5b   : > { %643 = vmatprep.mubr.bf16.mxu1 %v531_v51  ;;  %v555_v51 = vpack.c.bf16 %v522_v49, %v522_v49 }
  0x5f   : > { %1770 = vmatmul.mubr.msk.bf16.gmra.mrb[24].mxu0 %vm557_vm0, %v544_v63 }
  0x60   : > { %834 = vmatprep.mubr.bf16.mxu0 %v1882_v9 }
  0x62   : > { %644 = vmatmul.mubr.bf16.gmra.mrb[8].mxu1 %v530_v59 }
  0x63   : > { %653 = vmatprep.mubr.bf16.mxu1 %v534_v60 }
  0x67   : > { %1771 = vmatmul.mubr.msk.bf16.gmra.mrb[28].mxu0 %vm557_vm0, %v547_v8 }
  0x68   : > { %844 = vmatprep.mubr.bf16.mxu0 %v1882_v9 }
  0x6a   : > { %654 = vmatmul.mubr.bf16.gmra.mrb[12].mxu1 %v533_v4 }
  0x6b   : > { %663 = vmatprep.mubr.bf16.mxu1 %v537_v5 }
  0x6f   : > { %1772 = vmatmul.mubr.msk.bf16.gmra.mrb[32].mxu0 %vm557_vm0, %v550_v18 }
  0x70   : > { %854 = vmatprep.mubr.bf16.mxu0 %v1882_v9 }
  0x72   : > { %664 = vmatmul.mubr.bf16.gmra.mrb[16].mxu1 %v536_v14 }
  0x73   : > { %673 = vmatprep.mubr.bf16.mxu1 %v540_v15 }
  0x77   : > { %1773 = vmatmul.mubr.msk.bf16.gmra.mrb[36].mxu0 %vm557_vm0, %v553_v27 }
  0x78   : > { %864 = vmatprep.mubr.bf16.mxu0 %v1882_v9  ;;  %v509_v9 = vld [vmem:[%s2107_s17 + $0x180] sm:$0xff]  ;;  %s1760_s17 = sshll.u32 %s2928_s11, 3 }
  0x79   : > { %v548_v45 = vpack.c.bf16 %v512_v42, %v509_v9  ;;  %s2633_s25 = scalar_lea.vmem %s2888_s2, %s1760_s17  ;;  %s2643_s28 = scalar_lea.vmem %s2889_s3, %s1760_s17 }
  0x7a   : > { %674 = vmatmul.mubr.bf16.gmra.mrb[20].mxu1 %v539_v23 }
  0x7b   : > { %683 = vmatprep.mubr.bf16.mxu1 %v543_v24 }
  0x7f   : > { %1774 = vmatmul.mubr.msk.bf16.gmra.mrb[40].mxu0 %vm557_vm0, %v556_v35 }
  0x82   : > { %684 = vmatmul.mubr.bf16.gmra.mrb[24].mxu1 %v542_v32 }
  0x83   : > { %693 = vmatprep.mubr.bf16.mxu1 %v546_v33 }
  0x8a   : > { %694 = vmatmul.mubr.bf16.gmra.mrb[28].mxu1 %v545_v40 }
  0x8b   : > { %703 = vmatprep.mubr.bf16.mxu1 %v549_v41 }
  0x92   : > { %704 = vmatmul.mubr.bf16.gmra.mrb[32].mxu1 %v548_v45 }
  0x93   : > { %713 = vmatprep.mubr.bf16.mxu1 %v552_v46 }
  0x9a   : > { %714 = vmatmul.mubr.bf16.gmra.mrb[36].mxu1 %v551_v50 }
  0x9b   : > { %723 = vmatprep.mubr.bf16.mxu1 %v555_v51 }
  0xa2   : > { %724 = vmatmul.mubr.bf16.gmra.mrb[40].mxu1 %v554_v53 }
 0x102   : > { %v766_v54 = vpop.f32.mrb[0].mxu0 }
 0x103   : > { %v768_v55 = vpop.f32.mrb[1].mxu0 }
 0x104   : > { %v770_v56 = vpop.f32.mrb[2].mxu0 }
 0x105   : > { %v772_v57 = vpop.f32.mrb[3].mxu0 }
 0x10a   : > { %v776_v58 = vpop.f32.mrb[4].mxu0 }
 0x10b   : > { %v778_v59 = vpop.f32.mrb[5].mxu0 }
 0x10c   : > { %v780_v60 = vpop.f32.mrb[6].mxu0 }
 0x10d   : > { %v782_v61 = vpop.f32.mrb[7].mxu0 }
 0x112   : > { %v786_v62 = vpop.f32.mrb[8].mxu0 }
 0x113   : > { %v788_v63 = vpop.f32.mrb[9].mxu0 }
 0x114   : > { %v2271_v0 = vpop.f32.mrb[10].mxu0 }
 0x115   : > { %v2273_v1 = vpop.f32.mrb[11].mxu0 }
 0x11a   : > { %v2275_v2 = vpop.f32.mrb[12].mxu0 }
 0x11b   : > { %v2277_v3 = vpop.f32.mrb[13].mxu0 }
 0x11c   : > { %v2279_v4 = vpop.f32.mrb[14].mxu0 }
 0x11d   : > { %v2281_v5 = vpop.f32.mrb[15].mxu0 }
 0x122   : > { %v2295_v17 = vpop.f32.mrb[16].mxu0 }
 0x123   : > { %v2300_v20 = vpop.f32.mrb[17].mxu0 }
 0x124   : > { %v2307_v24 = vpop.f32.mrb[18].mxu0 }
 0x125   : > { %v625_v6 = vpop.f32.mrb[0].mxu1  ;;  %v2309_v26 = vpop.f32.mrb[19].mxu0 }
 0x126   : > { %v2283_v7 = vadd.f32 %v766_v54, %v625_v6  ;;  %v627_v8 = vpop.f32.mrb[1].mxu1 }
 0x127   : > { %v2285_v10 = vadd.f32 %v768_v55, %v627_v8  ;;  %v629_v11 = vpop.f32.mrb[2].mxu1 }
 0x128   : > { %v2287_v12 = vadd.f32 %v770_v56, %v629_v11  ;;  %v631_v13 = vpop.f32.mrb[3].mxu1  ;;  %v958_v19 = vmul.f32 %v2283_v7, %v2283_v7 }
 0x129   : > { %v2289_v14 = vadd.f32 %v772_v57, %v631_v13  ;;  %v874_v15 = vsel %vm873_vm1, %v2285_v10, 0.0  ;;  %v959_v16 = vmul.f32 %v2285_v10, %v2285_v10 }
 0x12a   : > { %v875_v18 = vadd.f32 %v874_v15, %v2283_v7  ;;  %v960_v36 = vmul.f32 %v2287_v12, %v2287_v12  ;;  %v2325_v39 = vpop.f32.mrb[20].mxu0 }
 0x12b   : > { %v1000_v21 = vsel %vm873_vm1, %v959_v16, 0.0  ;;  %v878_v22 = vsel %vm873_vm1, %v2289_v14, 0.0  ;;  %v961_v23 = vmul.f32 %v2289_v14, %v2289_v14  ;;  %v2328_v9 = vpop.f32.mrb[21].mxu0 }
 0x12c   : > { %876 = vadd.xlane.f32.xlu0 %v875_v18  ;;  %v1001_v25 = vadd.f32 %v1000_v21, %v958_v19  ;;  %v879_v30 = vadd.f32 %v878_v22, %v2287_v12  ;;  %v2336_v45 = vpop.f32.mrb[22].mxu0 }
 0x12d   : > { %v635_v27 = vpop.f32.mrb[4].mxu1  ;;  %v1004_v33 = vsel %vm873_vm1, %v961_v23, 0.0  ;;  %v2340_v47 = vpop.f32.mrb[23].mxu0 }
 0x12e   : > { %v2311_v28 = vadd.f32 %v776_v58, %v635_v27  ;;  %1002 = vadd.xlane.f32.xlu1 %v1001_v25  ;;  %v637_v29 = vpop.f32.mrb[5].mxu1  ;;  %v1005_v40 = vadd.f32 %v1004_v33, %v960_v36 }
 0x12f   : > { %v2314_v31 = vadd.f32 %v778_v59, %v637_v29  ;;  %v639_v32 = vpop.f32.mrb[6].mxu1 }
 0x130   : > { %v2317_v34 = vadd.f32 %v780_v60, %v639_v32  ;;  %880 = vadd.xlane.f32.xlu0 %v879_v30  ;;  %v641_v35 = vpop.f32.mrb[7].mxu1  ;;  %v962_v59 = vmul.f32 %v2311_v28, %v2311_v28 }
 0x131   : > { %v2321_v37 = vadd.f32 %v782_v61, %v641_v35  ;;  %v882_v38 = vsel %vm873_vm1, %v2314_v31, 0.0  ;;  %v963_v44 = vmul.f32 %v2314_v31, %v2314_v31 }
 0x132   : > { %v883_v41 = vadd.f32 %v882_v38, %v2311_v28  ;;  %v964_v46 = vmul.f32 %v2317_v34, %v2317_v34 }
 0x133   : > { %v965_v42 = vmul.f32 %v2321_v37, %v2321_v37  ;;  %v886_v43 = vsel %vm873_vm1, %v2321_v37, 0.0  ;;  %v1008_v56 = vsel %vm873_vm1, %v963_v44, 0.0 }
 0x134   : > { %1006 = vadd.xlane.f32.xlu0 %v1005_v40  ;;  %884 = vadd.xlane.f32.xlu1 %v883_v41  ;;  %v887_v52 = vadd.f32 %v886_v43, %v2317_v34 }
 0x135   : > { %v645_v48 = vpop.f32.mrb[8].mxu1  ;;  %v1012_v49 = vsel %vm873_vm1, %v965_v42, 0.0 }
 0x136   : > { %v2343_v50 = vadd.f32 %v786_v62, %v645_v48  ;;  %v1013_v51 = vadd.f32 %v1012_v49, %v964_v46  ;;  %v647_v53 = vpop.f32.mrb[9].mxu1  ;;  %v2359_v62 = vpop.f32.mrb[24].mxu0 }
 0x137   : > { %v2346_v54 = vadd.f32 %v788_v63, %v647_v53  ;;  %v649_v55 = vpop.f32.mrb[10].mxu1  ;;  %v1009_v63 = vadd.f32 %v1008_v56, %v962_v59 }
 0x138   : > { %1014 = vadd.xlane.f32.xlu0 %v1013_v51  ;;  %888 = vadd.xlane.f32.xlu1 %v887_v52  ;;  %v2350_v57 = vadd.f32 %v2271_v0, %v649_v55  ;;  %v651_v58 = vpop.f32.mrb[11].mxu1  ;;  %v2364_v0 = vpop.f32.mrb[25].mxu0  ;;  %v966_v27 = vmul.f32 %v2343_v50, %v2343_v50 }
 0x139   : > { %v2355_v60 = vadd.f32 %v2273_v1, %v651_v58  ;;  %v890_v61 = vsel %vm873_vm1, %v2346_v54, 0.0  ;;  %v967_v13 = vmul.f32 %v2346_v54, %v2346_v54  ;;  %v2372_v15 = vpop.f32.mrb[26].mxu0 }
 0x13a   : > { %v891_v6 = vadd.f32 %v890_v61, %v2343_v50  ;;  %v968_v8 = vmul.f32 %v2350_v57, %v2350_v57  ;;  %v2375_v18 = vpop.f32.mrb[27].mxu0 }
 0x13b   : > { %v894_v11 = vsel %vm873_vm1, %v2355_v60, 0.0  ;;  %v969_v1 = vmul.f32 %v2355_v60, %v2355_v60  ;;  %v1016_v32 = vsel %vm873_vm1, %v967_v13, 0.0 }
 0x13c   : > { %1010 = vadd.xlane.f32.xlu1 %v1009_v63  ;;  %892 = vadd.xlane.f32.xlu0 %v891_v6  ;;  %v895_v16 = vadd.f32 %v894_v11, %v2350_v57  ;;  %v1017_v40 = vadd.f32 %v1016_v32, %v966_v27 }
 0x13d   : > { %v655_v19 = vpop.f32.mrb[12].mxu1  ;;  %v1020_v21 = vsel %vm873_vm1, %v969_v1, 0.0 }
 0x13e   : > { %v2379_v22 = vadd.f32 %v2275_v2, %v655_v19  ;;  %v657_v23 = vpop.f32.mrb[13].mxu1  ;;  %v1021_v25 = vadd.f32 %v1020_v21, %v968_v8 }
 0x13f   : > { %v2384_v29 = vadd.f32 %v2277_v3, %v657_v23  ;;  %v659_v30 = vpop.f32.mrb[14].mxu1  ;;  %v2397_v3 = vpop.f32.mrb[28].mxu0 }
 0x140   : > { %896 = vadd.xlane.f32.xlu1 %v895_v16  ;;  %v2388_v33 = vadd.f32 %v2279_v4, %v659_v30  ;;  %1022 = vadd.xlane.f32.xlu0 %v1021_v25  ;;  %v661_v35 = vpop.f32.mrb[15].mxu1  ;;  %v2402_v42 = vpop.f32.mrb[29].mxu0  ;;  %v970_v48 = vmul.f32 %v2379_v22, %v2379_v22 }
 0x141   : > { %v2391_v2 = vadd.f32 %v2281_v5, %v661_v35  ;;  %v898_v36 = vsel %vm873_vm1, %v2384_v29, 0.0  ;;  %v971_v38 = vmul.f32 %v2384_v29, %v2384_v29  ;;  %v2408_v44 = vpop.f32.mrb[30].mxu0 }
 0x142   : > { %v899_v41 = vadd.f32 %v898_v36, %v2379_v22  ;;  %v972_v4 = vmul.f32 %v2388_v33, %v2388_v33  ;;  %v2413_v49 = vpop.f32.mrb[31].mxu0 }
 0x143   : > { %v902_v5 = vsel %vm873_vm1, %v2391_v2, 0.0  ;;  %v973_v43 = vmul.f32 %v2391_v2, %v2391_v2  ;;  %v1024_v53 = vsel %vm873_vm1, %v971_v38, 0.0  ;;  %v2433_v13 = vpop.f32.mrb[32].mxu0 }
 0x144   : > { %1018 = vadd.xlane.f32.xlu1 %v1017_v40  ;;  %900 = vadd.xlane.f32.xlu0 %v899_v41  ;;  %v903_v46 = vadd.f32 %v902_v5, %v2388_v33  ;;  %v1025_v8 = vadd.f32 %v1024_v53, %v970_v48  ;;  %v2438_v16 = vpop.f32.mrb[33].mxu0 }
 0x145   : > { %v665_v51 = vpop.f32.mrb[16].mxu1  ;;  %v1028_v52 = vsel %vm873_vm1, %v973_v43, 0.0  ;;  %v2444_v21 = vpop.f32.mrb[34].mxu0 }
 0x146   : > { %v2418_v55 = vadd.f32 %v2295_v17, %v665_v51  ;;  %v667_v56 = vpop.f32.mrb[17].mxu1  ;;  %v1029_v58 = vadd.f32 %v1028_v52, %v972_v4  ;;  %v2449_v27 = vpop.f32.mrb[35].mxu0 }
 0x147   : > { %v2421_v59 = vadd.f32 %v2300_v20, %v667_v56  ;;  %v669_v61 = vpop.f32.mrb[18].mxu1 }
 0x148   : > { %904 = vadd.xlane.f32.xlu1 %v903_v46  ;;  %v2424_v63 = vadd.f32 %v2307_v24, %v669_v61  ;;  %1030 = vadd.xlane.f32.xlu0 %v1029_v58  ;;  %v671_v6 = vpop.f32.mrb[19].mxu1  ;;  %v974_v25 = vmul.f32 %v2418_v55, %v2418_v55 }
 0x149   : > { %v2427_v11 = vadd.f32 %v2309_v26, %v671_v6  ;;  %v906_v17 = vsel %vm873_vm1, %v2421_v59, 0.0  ;;  %v975_v1 = vmul.f32 %v2421_v59, %v2421_v59 }
 0x14a   : > { %v907_v20 = vadd.f32 %v906_v17, %v2418_v55  ;;  %v976_v24 = vmul.f32 %v2424_v63, %v2424_v63  ;;  %v2469_v52 = vpop.f32.mrb[36].mxu0 }
 0x14b   : > { %v910_v19 = vsel %vm873_vm1, %v2427_v11, 0.0  ;;  %v977_v26 = vmul.f32 %v2427_v11, %v2427_v11  ;;  %v1032_v35 = vsel %vm873_vm1, %v975_v1, 0.0  ;;  %v2474_v53 = vpop.f32.mrb[37].mxu0 }
 0x14c   : > { %1026 = vadd.xlane.f32.xlu1 %v1025_v8  ;;  %908 = vadd.xlane.f32.xlu0 %v907_v20  ;;  %v911_v23 = vadd.f32 %v910_v19, %v2424_v63  ;;  %v1033_v46 = vadd.f32 %v1032_v35, %v974_v25  ;;  %v2480_v58 = vpop.f32.mrb[38].mxu0 }
 0x14d   : > { %v675_v30 = vpop.f32.mrb[20].mxu1  ;;  %v1036_v32 = vsel %vm873_vm1, %v977_v26, 0.0  ;;  %v2485_v8 = vpop.f32.mrb[39].mxu0 }
 0x14e   : > { %v2454_v36 = vadd.f32 %v2325_v39, %v675_v30  ;;  %v677_v38 = vpop.f32.mrb[21].mxu1  ;;  %v1037_v40 = vadd.f32 %v1036_v32, %v976_v24 }
 0x14f   : > { %v2457_v41 = vadd.f32 %v2328_v9, %v677_v38  ;;  %v679_v4 = vpop.f32.mrb[22].mxu1 }
 0x150   : > { %912 = vadd.xlane.f32.xlu1 %v911_v23  ;;  %v2460_v5 = vadd.f32 %v2336_v45, %v679_v4  ;;  %1038 = vadd.xlane.f32.xlu0 %v1037_v40  ;;  %v681_v43 = vpop.f32.mrb[23].mxu1  ;;  %v978_v6 = vmul.f32 %v2454_v36, %v2454_v36 }
 0x151   : > { %v2463_v48 = vadd.f32 %v2340_v47, %v681_v43  ;;  %v914_v39 = vsel %vm873_vm1, %v2457_v41, 0.0  ;;  %v979_v51 = vmul.f32 %v2457_v41, %v2457_v41 }
 0x152   : > { %v915_v9 = vadd.f32 %v914_v39, %v2454_v36  ;;  %v980_v45 = vmul.f32 %v2460_v5, %v2460_v5  ;;  %v2505_v4 = vpop.f32.mrb[40].mxu0 }
 0x153   : > { %v918_v56 = vsel %vm873_vm1, %v2463_v48, 0.0  ;;  %v981_v47 = vmul.f32 %v2463_v48, %v2463_v48  ;;  %v1040_v20 = vsel %vm873_vm1, %v979_v51, 0.0  ;;  %v2510_v43 = vpop.f32.mrb[41].mxu0 }
 0x154   : > { %1034 = vadd.xlane.f32.xlu1 %v1033_v46  ;;  %916 = vadd.xlane.f32.xlu0 %v915_v9  ;;  %v919_v61 = vadd.f32 %v918_v56, %v2460_v5  ;;  %v1041_v35 = vadd.f32 %v1040_v20, %v978_v6  ;;  %v870_v39 = vpop.f32.mrb[42].mxu0 }
 0x155   : > { %v685_v17 = vpop.f32.mrb[24].mxu1  ;;  %v1044_v1 = vsel %vm873_vm1, %v981_v47, 0.0 }
 0x156   : > { %v2490_v24 = vadd.f32 %v2359_v62, %v685_v17  ;;  %v687_v19 = vpop.f32.mrb[25].mxu1  ;;  %v1045_v26 = vadd.f32 %v1044_v1, %v980_v45  ;;  %v871_v45 = vpop.f32.mrb[43].mxu0 }
 0x157   : > { %v2493_v23 = vadd.f32 %v2364_v0, %v687_v19  ;;  %v689_v25 = vpop.f32.mrb[26].mxu1 }
 0x158   : > { %920 = vadd.xlane.f32.xlu1 %v919_v61  ;;  %v2496_v30 = vadd.f32 %v2372_v15, %v689_v25  ;;  %1046 = vadd.xlane.f32.xlu0 %v1045_v26  ;;  %v691_v32 = vpop.f32.mrb[27].mxu1  ;;  %v982_v9 = vmul.f32 %v2490_v24, %v2490_v24 }
 0x159   : > { %v2499_v38 = vadd.f32 %v2375_v18, %v691_v32  ;;  %v922_v62 = vsel %vm873_vm1, %v2493_v23, 0.0  ;;  %v983_v40 = vmul.f32 %v2493_v23, %v2493_v23 }
 0x15a   : > { %v923_v0 = vadd.f32 %v922_v62, %v2490_v24  ;;  %v984_v15 = vmul.f32 %v2496_v30, %v2496_v30 }
 0x15b   : > { %v926_v46 = vsel %vm873_vm1, %v2499_v38, 0.0  ;;  %v985_v18 = vmul.f32 %v2499_v38, %v2499_v38  ;;  %v1048_v61 = vsel %vm873_vm1, %v983_v40, 0.0 }
 0x15c   : > { %1042 = vadd.xlane.f32.xlu1 %v1041_v35  ;;  %924 = vadd.xlane.f32.xlu0 %v923_v0  ;;  %v927_v51 = vadd.f32 %v926_v46, %v2496_v30  ;;  %v1049_v32 = vadd.f32 %v1048_v61, %v982_v9 }
 0x15d   : > { %v695_v56 = vpop.f32.mrb[28].mxu1  ;;  %v1052_v47 = vsel %vm873_vm1, %v985_v18, 0.0 }
 0x15e   : > { %v2522_v6 = vadd.f32 %v2397_v3, %v695_v56  ;;  %v697_v17 = vpop.f32.mrb[29].mxu1  ;;  %v1053_v1 = vadd.f32 %v1052_v47, %v984_v15 }
 0x15f   : > { %v2525_v20 = vadd.f32 %v2402_v42, %v697_v17  ;;  %v699_v19 = vpop.f32.mrb[30].mxu1 }
 0x160   : > { %928 = vadd.xlane.f32.xlu1 %v927_v51  ;;  %v2528_v26 = vadd.f32 %v2408_v44, %v699_v19  ;;  %1054 = vadd.xlane.f32.xlu0 %v1053_v1  ;;  %v701_v25 = vpop.f32.mrb[31].mxu1  ;;  %v986_v15 = vmul.f32 %v2522_v6, %v2522_v6 }
 0x161   : > { %v2531_v35 = vadd.f32 %v2413_v49, %v701_v25  ;;  %v930_v3 = vsel %vm873_vm1, %v2525_v20, 0.0  ;;  %v987_v62 = vmul.f32 %v2525_v20, %v2525_v20 }
 0x162   : > { %2903 = vst [vmem:[#allocation2_spill] sm:$0xff] %v2528_v26  ;;  %v931_v42 = vadd.f32 %v930_v3, %v2522_v6  ;;  %v988_v40 = vmul.f32 %v2528_v26, %v2528_v26 }
 0x163   : > { %2904 = vst [vmem:[#allocation3_spill] sm:$0xff] %v2531_v35  ;;  %v934_v44 = vsel %vm873_vm1, %v2531_v35, 0.0  ;;  %v989_v0 = vmul.f32 %v2531_v35, %v2531_v35  ;;  %v1056_v39 = vsel %vm873_vm1, %v987_v62, 0.0 }
 0x164   : > { %1050 = vadd.xlane.f32.xlu1 %v1049_v32  ;;  %932 = vadd.xlane.f32.xlu0 %v931_v42  ;;  %v935_v49 = vadd.f32 %v934_v44, %v2528_v26  ;;  %v1057_v1 = vadd.f32 %v1056_v39, %v986_v15 }
 0x165   : > { %v705_v46 = vpop.f32.mrb[32].mxu1  ;;  %v1060_v18 = vsel %vm873_vm1, %v989_v0, 0.0 }
 0x166   : > { %v2550_v51 = vadd.f32 %v2433_v13, %v705_v46  ;;  %v707_v9 = vpop.f32.mrb[33].mxu1  ;;  %v1061_v45 = vadd.f32 %v1060_v18, %v988_v40 }
 0x167   : > { %v2553_v56 = vadd.f32 %v2438_v16, %v707_v9  ;;  %v709_v47 = vpop.f32.mrb[34].mxu1 }
 0x168   : > { %2905 = vst [vmem:[#allocation4_spill] sm:$0xff] %v2550_v51  ;;  %936 = vadd.xlane.f32.xlu1 %v935_v49  ;;  %v2556_v61 = vadd.f32 %v2444_v21, %v709_v47  ;;  %1062 = vadd.xlane.f32.xlu0 %v1061_v45  ;;  %v711_v17 = vpop.f32.mrb[35].mxu1  ;;  %v990_v62 = vmul.f32 %v2550_v51, %v2550_v51 }
 0x169   : > { %2906 = vst [vmem:[#allocation5_spill] sm:$0xff] %v2553_v56  ;;  %v2559_v19 = vadd.f32 %v2449_v27, %v711_v17  ;;  %v938_v13 = vsel %vm873_vm1, %v2553_v56, 0.0  ;;  %v991_v25 = vmul.f32 %v2553_v56, %v2553_v56 }
 0x16a   : > { %2907 = vst [vmem:[#allocation6_spill] sm:$0xff] %v2556_v61  ;;  %v939_v16 = vadd.f32 %v938_v13, %v2550_v51  ;;  %v992_v32 = vmul.f32 %v2556_v61, %v2556_v61 }
 0x16b   : > { %2908 = vst [vmem:[#allocation7_spill] sm:$0xff] %v2559_v19  ;;  %v942_v21 = vsel %vm873_vm1, %v2559_v19, 0.0  ;;  %v993_v3 = vmul.f32 %v2559_v19, %v2559_v19  ;;  %v1064_v44 = vsel %vm873_vm1, %v991_v25, 0.0 }
 0x16c   : > { %1058 = vadd.xlane.f32.xlu1 %v1057_v1  ;;  %940 = vadd.xlane.f32.xlu0 %v939_v16  ;;  %v943_v27 = vadd.f32 %v942_v21, %v2556_v61  ;;  %v1065_v45 = vadd.f32 %v1064_v44, %v990_v62 }
 0x16d   : > { %v715_v42 = vpop.f32.mrb[36].mxu1  ;;  %v1068_v40 = vsel %vm873_vm1, %v993_v3, 0.0 }
 0x16e   : > { %v2578_v0 = vadd.f32 %v2469_v52, %v715_v42  ;;  %v717_v49 = vpop.f32.mrb[37].mxu1  ;;  %v1069_v15 = vadd.f32 %v1068_v40, %v992_v32 }
 0x16f   : > { %v2581_v46 = vadd.f32 %v2474_v53, %v717_v49  ;;  %v719_v18 = vpop.f32.mrb[38].mxu1 }
 0x170   : > { %2909 = vst [vmem:[#allocation8_spill] sm:$0xff] %v2578_v0  ;;  %944 = vadd.xlane.f32.xlu1 %v943_v27  ;;  %v2584_v39 = vadd.f32 %v2480_v58, %v719_v18  ;;  %1070 = vadd.xlane.f32.xlu0 %v1069_v15  ;;  %v721_v9 = vpop.f32.mrb[39].mxu1  ;;  %v994_v25 = vmul.f32 %v2578_v0, %v2578_v0 }
 0x171   : > { %2910 = vst [vmem:[#allocation9_spill] sm:$0xff] %v2581_v46  ;;  %v2587_v47 = vadd.f32 %v2485_v8, %v721_v9  ;;  %v946_v52 = vsel %vm873_vm1, %v2581_v46, 0.0  ;;  %v995_v17 = vmul.f32 %v2581_v46, %v2581_v46 }
 0x172   : > { %2911 = vst [vmem:[#allocation10_spill] sm:$0xff] %v2584_v39  ;;  %v947_v53 = vadd.f32 %v946_v52, %v2578_v0  ;;  %v996_v1 = vmul.f32 %v2584_v39, %v2584_v39 }
 0x173   : > { %2912 = vst [vmem:[#allocation11_spill] sm:$0xff] %v2587_v47  ;;  %v950_v58 = vsel %vm873_vm1, %v2587_v47, 0.0  ;;  %v997_v13 = vmul.f32 %v2587_v47, %v2587_v47  ;;  %v1072_v21 = vsel %vm873_vm1, %v995_v17, 0.0  ;;  %v1232_v47 = vld [vmem:[%s2633_s25 + $0x8] sm:$0xff] }
 0x174   : > { %1066 = vadd.xlane.f32.xlu1 %v1065_v45  ;;  %948 = vadd.xlane.f32.xlu0 %v947_v53  ;;  %v951_v8 = vadd.f32 %v950_v58, %v2584_v39  ;;  %v1073_v44 = vadd.f32 %v1072_v21, %v994_v25 }
 0x175   : > { %v725_v16 = vpop.f32.mrb[40].mxu1  ;;  %v1076_v32 = vsel %vm873_vm1, %v997_v13, 0.0 }
 0x176   : > { %v2606_v3 = vadd.f32 %v2505_v4, %v725_v16  ;;  %v727_v27 = vpop.f32.mrb[41].mxu1  ;;  %v1077_v62 = vadd.f32 %v1076_v32, %v996_v1 }
 0x177   : > { %v2609_v42 = vadd.f32 %v2510_v43, %v727_v27  ;;  %v729_v40 = vpop.f32.mrb[42].mxu1 }
 0x178   : > { %2913 = vst [vmem:[#allocation12_spill] sm:$0xff] %v2606_v3  ;;  %952 = vadd.xlane.f32.xlu1 %v951_v8  ;;  %1078 = vadd.xlane.f32.xlu0 %v1077_v62  ;;  %v998_v49 = vmul.f32 %v2606_v3, %v2606_v3  ;;  %v730_v15 = vpop.f32.mrb[43].mxu1 }
 0x179   : > { %2914 = vst [vmem:[#allocation13_spill] sm:$0xff] %v2609_v42  ;;  %v954_v18 = vsel %vm873_vm1, %v2609_v42, 0.0  ;;  %v999_v4 = vmul.f32 %v2609_v42, %v2609_v42 }
 0x17a   : > { %v955_v9 = vadd.f32 %v954_v18, %v2606_v3 }
 0x17b   : > { %v1080_v45 = vsel %vm873_vm1, %v999_v4, 0.0 }
 0x17c   : > { %1074 = vadd.xlane.f32.xlu1 %v1073_v44  ;;  %956 = vadd.xlane.f32.xlu0 %v955_v9  ;;  %v1081_v43 = vadd.f32 %v1080_v45, %v998_v49 }
 0x180   : > { %1082 = vadd.xlane.f32.xlu1 %v1081_v43 }
 0x1b9   : > { %v877_v52 = vpop.xlane.xlu0 %876 }
 0x1ba   : > { %v1084_v17 = vmul.f32 0.0051020407, %v877_v52 }
 0x1bb   : > { %v1003_v53 = vpop.xlane.xlu1 %1002 }
 0x1bc   : > { %v1126_v1 = vmul.f32 %v1084_v17, %v1084_v17  ;;  %v1105_v58 = vmul.f32 0.0051020407, %v1003_v53 }
 0x1bd   : > { %v881_v13 = vpop.xlane.xlu0 %880 }
 0x1be   : > { %v1147_v8 = vsub.f32 %v1105_v58, %v1126_v1  ;;  %v2619_v25 = vmul.f32 0.0051020407, %v881_v13 }
 0x1c0   : > { %v1168_v16 = vmax.f32 %v1147_v8, 0.0  ;;  %v1127_v62 = vmul.f32 %v2619_v25, %v2619_v25 }
 0x1c1   : > { %v1007_v32 = vpop.xlane.xlu0 %1006  ;;  %v885_v21 = vpop.xlane.xlu1 %884 }
 0x1c2   : > { %v1189_v27 = vadd.f32 1e-05, %v1168_v16  ;;  %v1106_v40 = vmul.f32 0.0051020407, %v1007_v32  ;;  %v2623_v4 = vmul.f32 0.0051020407, %v885_v21 }
 0x1c3   : > { %v1231_v21 = vld [vmem:[%s2633_s25] sm:$0xff] }
 0x1c4   : > { %1832 = vrsqrt.f32 %v1189_v27  ;;  %v1148_v44 = vsub.f32 %v1106_v40, %v1127_v62  ;;  %v1128_v58 = vmul.f32 %v2623_v4, %v2623_v4 }
 0x1c5   : > { %v1015_v49 = vpop.xlane.xlu0 %1014  ;;  %v889_v15 = vpop.xlane.xlu1 %888 }
 0x1c6   : > { %v1169_v18 = vmax.f32 %v1148_v44, 0.0  ;;  %v2626_v9 = vmul.f32 0.0051020407, %v889_v15  ;;  %v1108_v43 = vmul.f32 0.0051020407, %v1015_v49 }
 0x1c8   : > { %v1190_v45 = vadd.f32 1e-05, %v1169_v18  ;;  %v1129_v52 = vmul.f32 %v2626_v9, %v2626_v9 }
 0x1c9   : > { %v1011_v53 = vpop.xlane.xlu1 %1010  ;;  %v893_v1 = vpop.xlane.xlu0 %892 }
 0x1ca   : > { %1834 = vrsqrt.f32 %v1190_v45  ;;  %v1150_v13 = vsub.f32 %v1108_v43, %v1129_v52  ;;  %v1107_v8 = vmul.f32 0.0051020407, %v1011_v53  ;;  %v2638_v27 = vmul.f32 0.0051020407, %v893_v1  ;;  %v1273_v1 = vld [vmem:[%s2643_s28] sm:$0xff] }
 0x1cc   : > { %v1171_v16 = vmax.f32 %v1150_v13, 0.0  ;;  %v1149_v32 = vsub.f32 %v1107_v8, %v1128_v58 }
 0x1cd   : > { %v897_v62 = vpop.xlane.xlu1 %896  ;;  %v1023_v40 = vpop.xlane.xlu0 %1022 }
 0x1ce   : > { %v1833_v44 = vpop.eup %1832  ;;  %v1192_v49 = vadd.f32 1e-05, %v1171_v16  ;;  %v1170_v15 = vmax.f32 %v1149_v32, 0.0  ;;  %v2645_v18 = vmul.f32 0.0051020407, %v897_v62  ;;  %v1130_v16 = vmul.f32 %v2638_v27, %v2638_v27 }
 0x1cf   : > { %v1110_v45 = vmul.f32 0.0051020407, %v1023_v40  ;;  %v1252_v43 = vmul.f32 %v1833_v44, %v1231_v21 }
 0x1d0   : > { %1836 = vrsqrt.f32 %v1192_v49  ;;  %v1191_v52 = vadd.f32 1e-05, %v1170_v15  ;;  %v1131_v53 = vmul.f32 %v2645_v18, %v2645_v18 }
 0x1d1   : > { %v1019_v58 = vpop.xlane.xlu1 %1018  ;;  %1338 = vperm.xlu0 %1830, %v1252_v43   ;;  %v901_v13 = vpop.xlane.xlu0 %900  ;;  %v1294_v8 = vmul.f32 %v1252_v43, %v1084_v17 }
 0x1d2   : > { %1838 = vrsqrt.f32 %v1191_v52  ;;  %v1152_v32 = vsub.f32 %v1110_v45, %v1131_v53  ;;  %v1109_v62 = vmul.f32 0.0051020407, %v1019_v58  ;;  %v2653_v15 = vmul.f32 0.0051020407, %v901_v13  ;;  %v1274_v52 = vld [vmem:[%s2643_s28 + $0x8] sm:$0xff] }
 0x1d3   : > { %v1315_v40 = vsub.f32 %v1273_v1, %v1294_v8 }
 0x1d4   : > { %v1835_v21 = vpop.eup %1834  ;;  %v1173_v44 = vmax.f32 %v1152_v32, 0.0  ;;  %v1151_v49 = vsub.f32 %v1109_v62, %v1130_v16  ;;  %v1132_v58 = vmul.f32 %v2653_v15, %v2653_v15 }
 0x1d5   : > { %v905_v39 = vpop.xlane.xlu1 %904  ;;  %1485 = vperm.xlu0 %1830, %v1315_v40   ;;  %v1031_v42 = vpop.xlane.xlu0 %1030  ;;  %v1253_v3 = vmul.f32 %v1835_v21, %v1232_v47 }
 0x1d6   : > { %v1172_v17 = vmax.f32 %v1151_v49, 0.0  ;;  %v2655_v43 = vmul.f32 0.0051020407, %v905_v39  ;;  %v1112_v46 = vmul.f32 0.0051020407, %v1031_v42  ;;  %v1234_v39 = vld [vmem:[%s2633_s25 + $0x18] sm:$0xff] }
 0x1d7   : > { %1343 = vperm.xlu1 %1831, %v1253_v3   ;;  %v1295_v45 = vmul.f32 %v1253_v3, %v2619_v25  ;;  %v1194_v53 = vadd.f32 1e-05, %v1173_v44  ;;  %v1233_v42 = vld [vmem:[%s2633_s25 + $0x10] sm:$0xff] }
 0x1d8   : > { %v1193_v1 = vadd.f32 1e-05, %v1172_v17  ;;  %v1133_v13 = vmul.f32 %v2655_v43, %v2655_v43 }
 0x1d9   : > { %v1027_v8 = vpop.xlane.xlu1 %1026  ;;  %v909_v16 = vpop.xlane.xlu0 %908  ;;  %v1316_v47 = vsub.f32 %v1274_v52, %v1295_v45  ;;  %v1275_v52 = vld [vmem:[%s2643_s28 + $0x10] sm:$0xff] }
 0x1da   : > { %v1837_v32 = vpop.eup %1836  ;;  %1840 = vrsqrt.f32 %v1193_v1  ;;  %v1111_v62 = vmul.f32 0.0051020407, %v1027_v8  ;;  %v1154_v40 = vsub.f32 %v1112_v46, %v1133_v13  ;;  %v2665_v21 = vmul.f32 0.0051020407, %v909_v16 }
 0x1db   : > { %1490 = vperm.xlu1 %1831, %v1316_v47   ;;  %1842 = vrsqrt.f32 %v1194_v53  ;;  %v1255_v44 = vmul.f32 %v1837_v32, %v1234_v39 }
 0x1dc   : > { %v1839_v3 = vpop.eup %1838  ;;  %v1153_v25 = vsub.f32 %v1111_v62, %v1132_v58  ;;  %v1175_v45 = vmax.f32 %v1154_v40, 0.0  ;;  %v1134_v53 = vmul.f32 %v2665_v21, %v2665_v21  ;;  %v1235_v40 = vld [vmem:[%s2633_s25 + $0x20] sm:$0xff] }
 0x1dd   : > { %v913_v49 = vpop.xlane.xlu1 %912  ;;  %v1039_v17 = vpop.xlane.xlu0 %1038  ;;  %v1254_v0 = vmul.f32 %v1839_v3, %v1233_v42  ;;  %v1297_v8 = vmul.f32 %v1255_v44, %v2626_v9  ;;  %v1276_v42 = vld [vmem:[%s2643_s28 + $0x18] sm:$0xff] }
 0x1de   : > { %v1174_v19 = vmax.f32 %v1153_v25, 0.0  ;;  %v2667_v61 = vmul.f32 0.0051020407, %v913_v49  ;;  %v1114_v1 = vmul.f32 0.0051020407, %v1039_v17 }
 0x1df   : > { %1348 = vperm.xlu1 %1831, %v1254_v0   ;;  %v1296_v46 = vmul.f32 %v1254_v0, %v2623_v4  ;;  %v1196_v3 = vadd.f32 1e-05, %v1175_v45  ;;  %v1318_v17 = vsub.f32 %v1276_v42, %v1297_v8 }
 0x1e0   : > { %v1195_v13 = vadd.f32 1e-05, %v1174_v19  ;;  %v1135_v58 = vmul.f32 %v2667_v61, %v2667_v61 }
 0x1e1   : > { %v1035_v16 = vpop.xlane.xlu1 %1034  ;;  %v917_v47 = vpop.xlane.xlu0 %916  ;;  %v1317_v32 = vsub.f32 %v1275_v52, %v1296_v46  ;;  %v1236_v52 = vld [vmem:[%s2633_s25 + $0x28] sm:$0xff] }
 0x1e2   : > { %1844 = vrsqrt.f32 %v1195_v13  ;;  %v1156_v39 = vsub.f32 %v1114_v1, %v1135_v58  ;;  %v1113_v62 = vmul.f32 0.0051020407, %v1035_v16  ;;  %v2678_v25 = vmul.f32 0.0051020407, %v917_v47  ;;  %v1277_v16 = vld [vmem:[%s2643_s28 + $0x20] sm:$0xff] }
 0x1e3   : > { %1353 = vperm.xlu1 %1831, %v1255_v44   ;;  %1495 = vperm.xlu0 %1830, %v1317_v32   ;;  %1846 = vrsqrt.f32 %v1196_v3 }
 0x1e4   : > { %v1841_v19 = vpop.eup %1840  ;;  %v1177_v0 = vmax.f32 %v1156_v39, 0.0  ;;  %v1155_v4 = vsub.f32 %v1113_v62, %v1134_v53  ;;  %v1136_v47 = vmul.f32 %v2678_v25, %v2678_v25 }
 0x1e5   : > { %v921_v49 = vpop.xlane.xlu1 %920  ;;  %v1047_v9 = vpop.xlane.xlu0 %1046  ;;  %v1256_v56 = vmul.f32 %v1841_v19, %v1235_v40  ;;  %v1237_v19 = vld [vmem:[%s2633_s25 + $0x30] sm:$0xff] }
 0x1e6   : > { %v1843_v46 = vpop.eup %1842  ;;  %v1198_v13 = vadd.f32 1e-05, %v1177_v0  ;;  %v1176_v1 = vmax.f32 %v1155_v4, 0.0  ;;  %v2681_v58 = vmul.f32 0.0051020407, %v921_v49 }
 0x1e7   : > { %v1116_v44 = vmul.f32 0.0051020407, %v1047_v9  ;;  %1500 = vperm.xlu1 %1831, %v1318_v17   ;;  %v1298_v45 = vmul.f32 %v1256_v56, %v2638_v27  ;;  %v1257_v42 = vmul.f32 %v1843_v46, %v1236_v52 }
 0x1e8   : > { %1848 = vrsqrt.f32 %v1198_v13  ;;  %v1197_v53 = vadd.f32 1e-05, %v1176_v1  ;;  %v1137_v8 = vmul.f32 %v2681_v58, %v2681_v58  ;;  %v1278_v13 = vld [vmem:[%s2643_s28 + $0x28] sm:$0xff] }
 0x1e9   : > { %v1043_v32 = vpop.xlane.xlu1 %1042  ;;  %v925_v39 = vpop.xlane.xlu0 %924  ;;  %v1319_v62 = vsub.f32 %v1277_v16, %v1298_v45  ;;  %v1299_v1 = vmul.f32 %v1257_v42, %v2645_v18 }
 0x1ea   : > { %1850 = vrsqrt.f32 %v1197_v53  ;;  %v1158_v40 = vsub.f32 %v1116_v44, %v1137_v8  ;;  %v1115_v3 = vmul.f32 0.0051020407, %v1043_v32  ;;  %v2690_v49 = vmul.f32 0.0051020407, %v925_v39  ;;  %v1279_v44 = vld [vmem:[%s2643_s28 + $0x30] sm:$0xff] }
 0x1eb   : > { %1358 = vperm.xlu1 %1831, %v1256_v56   ;;  %1505 = vperm.xlu0 %1830, %v1319_v62   ;;  %v1320_v62 = vsub.f32 %v1278_v13, %v1299_v1 }
 0x1ec   : > { %v1845_v27 = vpop.eup %1844  ;;  %v1179_v0 = vmax.f32 %v1158_v40, 0.0  ;;  %v1157_v4 = vsub.f32 %v1115_v3, %v1136_v47  ;;  %v1138_v47 = vmul.f32 %v2690_v49, %v2690_v49 }
 0x1ed   : > { %v929_v9 = vpop.xlane.xlu1 %928  ;;  %v1055_v17 = vpop.xlane.xlu0 %1054  ;;  %v1258_v51 = vmul.f32 %v1845_v27, %v1237_v19  ;;  %v1240_v27 = vld [vmem:[%s2633_s25 + $0x48] sm:$0xff] }
 0x1ee   : > { %v1200_v16 = vadd.f32 1e-05, %v1179_v0  ;;  %v1178_v52 = vmax.f32 %v1157_v4, 0.0  ;;  %v2694_v46 = vmul.f32 0.0051020407, %v929_v9  ;;  %v1847_v8 = vpop.eup %1846  ;;  %v1239_v0 = vld [vmem:[%s2633_s25 + $0x40] sm:$0xff] }
 0x1ef   : > { %v1118_v45 = vmul.f32 0.0051020407, %v1055_v17  ;;  %1363 = vperm.xlu1 %1831, %v1257_v42   ;;  %v1300_v56 = vmul.f32 %v1258_v51, %v2653_v15  ;;  %v1238_v15 = vld [vmem:[%s2633_s25 + $0x38] sm:$0xff] }
 0x1f0   : > { %1852 = vrsqrt.f32 %v1200_v16  ;;  %v1199_v53 = vadd.f32 1e-05, %v1178_v52  ;;  %v1139_v18 = vmul.f32 %v2694_v46, %v2694_v46  ;;  %v1259_v13 = vmul.f32 %v1847_v8, %v1238_v15  ;;  %v1242_v15 = vld [vmem:[%s2633_s25 + $0x58] sm:$0xff] }
 0x1f1   : > { %v1051_v32 = vpop.xlane.xlu1 %1050  ;;  %v933_v39 = vpop.xlane.xlu0 %932  ;;  %v1321_v40 = vsub.f32 %v1279_v44, %v1300_v56 }
 0x1f2   : > { %v1849_v3 = vpop.eup %1848  ;;  %1854 = vrsqrt.f32 %v1199_v53  ;;  %v1160_v42 = vsub.f32 %v1118_v45, %v1139_v18  ;;  %v1117_v19 = vmul.f32 0.0051020407, %v1051_v32  ;;  %v2705_v16 = vmul.f32 0.0051020407, %v933_v39  ;;  %v1281_v53 = vld [vmem:[%s2643_s28 + $0x40] sm:$0xff] }
 0x1f3   : > { %1510 = vperm.xlu1 %1831, %v1320_v62   ;;  %1515 = vperm.xlu0 %1830, %v1321_v40   ;;  %v1261_v26 = vmul.f32 %v1849_v3, %v1240_v27  ;;  %v1280_v27 = vld [vmem:[%s2643_s28 + $0x38] sm:$0xff] }
 0x1f4   : > { %v1851_v4 = vpop.eup %1850  ;;  %v1181_v9 = vmax.f32 %v1160_v42, 0.0  ;;  %v1159_v17 = vsub.f32 %v1117_v19, %v1138_v47  ;;  %v1140_v39 = vmul.f32 %v2705_v16, %v2705_v16 }
 0x1f5   : > { %v937_v52 = vpop.xlane.xlu1 %936  ;;  %v1063_v35 = vpop.xlane.xlu0 %1062  ;;  %v1260_v1 = vmul.f32 %v1851_v4, %v1239_v0 }
 0x1f6   : > { %v1202_v44 = vadd.f32 1e-05, %v1181_v9  ;;  %v1180_v56 = vmax.f32 %v1159_v17, 0.0  ;;  %v2707_v45 = vmul.f32 0.0051020407, %v937_v52 }
 0x1f7   : > { %v1120_v18 = vmul.f32 0.0051020407, %v1063_v35  ;;  %1368 = vperm.xlu1 %1831, %v1258_v51   ;;  %1383 = vperm.xlu0 %1830, %v1261_v26   ;;  %v1302_v47 = vmul.f32 %v1260_v1, %v2665_v21  ;;  %v1301_v35 = vmul.f32 %v1259_v13, %v2655_v43  ;;  %v1241_v21 = vld [vmem:[%s2633_s25 + $0x50] sm:$0xff] }
 0x1f8   : > { %1856 = vrsqrt.f32 %v1202_v44  ;;  %v1201_v32 = vadd.f32 1e-05, %v1180_v56  ;;  %v1141_v8 = vmul.f32 %v2707_v45, %v2707_v45 }
 0x1f9   : > { %v1059_v62 = vpop.xlane.xlu1 %1058  ;;  %v941_v40 = vpop.xlane.xlu0 %940  ;;  %v1323_v3 = vsub.f32 %v1281_v53, %v1302_v47  ;;  %v1322_v56 = vsub.f32 %v1280_v27, %v1301_v35 }
 0x1fa   : > { %v1853_v42 = vpop.eup %1852  ;;  %1858 = vrsqrt.f32 %v1201_v32  ;;  %v1162_v51 = vsub.f32 %v1120_v18, %v1141_v8  ;;  %v1119_v19 = vmul.f32 0.0051020407, %v1059_v62  ;;  %v2719_v17 = vmul.f32 0.0051020407, %v941_v40  ;;  %v1283_v8 = vld [vmem:[%s2643_s28 + $0x50] sm:$0xff] }
 0x1fb   : > { %1373 = vperm.xlu1 %1831, %v1259_v13   ;;  %1525 = vperm.xlu0 %1830, %v1323_v3   ;;  %v1263_v53 = vmul.f32 %v1853_v42, %v1242_v15 }
 0x1fc   : > { %v1855_v0 = vpop.eup %1854  ;;  %v1183_v4 = vmax.f32 %v1162_v51, 0.0  ;;  %v1161_v9 = vsub.f32 %v1119_v19, %v1140_v39  ;;  %v1142_v40 = vmul.f32 %v2719_v17, %v2719_v17  ;;  %v1303_v19 = vmul.f32 %v1261_v26, %v2667_v61 }
 0x1fd   : > { %v945_v52 = vpop.xlane.xlu1 %944  ;;  %v1071_v44 = vpop.xlane.xlu0 %1070  ;;  %v1262_v43 = vmul.f32 %v1855_v0, %v1241_v21  ;;  %v1282_v0 = vld [vmem:[%s2643_s28 + $0x48] sm:$0xff] }
 0x1fe   : > { %v1204_v47 = vadd.f32 1e-05, %v1183_v4  ;;  %v1182_v32 = vmax.f32 %v1161_v9, 0.0  ;;  %v2721_v18 = vmul.f32 0.0051020407, %v945_v52  ;;  %v1244_v4 = vld [vmem:[%s2633_s25 + $0x68] sm:$0xff] }
 0x1ff   : > { %v1122_v62 = vmul.f32 0.0051020407, %v1071_v44  ;;  %1520 = vperm.xlu1 %1831, %v1322_v56   ;;  %1393 = vperm.xlu0 %1830, %v1263_v53   ;;  %v1304_v13 = vmul.f32 %v1262_v43, %v2678_v25  ;;  %v1243_v25 = vld [vmem:[%s2633_s25 + $0x60] sm:$0xff] }
 0x200   : > { %1860 = vrsqrt.f32 %v1204_v47  ;;  %v1203_v39 = vadd.f32 1e-05, %v1182_v32  ;;  %v1143_v3 = vmul.f32 %v2721_v18, %v2721_v18 }
 0x201   : > { %v1067_v35 = vpop.xlane.xlu1 %1066  ;;  %v949_v42 = vpop.xlane.xlu0 %948  ;;  %v1325_v51 = vsub.f32 %v1283_v8, %v1304_v13  ;;  %v1324_v8 = vsub.f32 %v1282_v0, %v1303_v19  ;;  %v1305_v0 = vmul.f32 %v1263_v53, %v2681_v58 }
 0x202   : > { %v1857_v27 = vpop.eup %1856  ;;  %1862 = vrsqrt.f32 %v1203_v39  ;;  %v1164_v15 = vsub.f32 %v1122_v62, %v1143_v3  ;;  %v1121_v21 = vmul.f32 0.0051020407, %v1067_v35  ;;  %v2733_v56 = vmul.f32 0.0051020407, %v949_v42  ;;  %v1285_v3 = vld [vmem:[%s2643_s28 + $0x60] sm:$0xff] }
 0x203   : > { %1378 = vperm.xlu1 %1831, %v1260_v1   ;;  %1535 = vperm.xlu0 %1830, %v1325_v51   ;;  %v1265_v13 = vmul.f32 %v1857_v27, %v1244_v4 }
 0x204   : > { %v1859_v9 = vpop.eup %1858  ;;  %v1185_v52 = vmax.f32 %v1164_v15, 0.0  ;;  %v1163_v44 = vsub.f32 %v1121_v21, %v1142_v40  ;;  %v1144_v42 = vmul.f32 %v2733_v56, %v2733_v56  ;;  %v1284_v21 = vld [vmem:[%s2643_s28 + $0x58] sm:$0xff] }
 0x205   : > { %v953_v47 = vpop.xlane.xlu1 %952  ;;  %v1079_v32 = vpop.xlane.xlu0 %1078  ;;  %v1264_v26 = vmul.f32 %v1859_v9, %v1243_v25 }
 0x206   : > { %v1206_v61 = vadd.f32 1e-05, %v1185_v52  ;;  %v1184_v62 = vmax.f32 %v1163_v44, 0.0  ;;  %v2735_v39 = vmul.f32 0.0051020407, %v953_v47  ;;  %v1246_v52 = vld [vmem:[%s2633_s25 + $0x78] sm:$0xff] }
 0x207   : > { %v1124_v35 = vmul.f32 0.0051020407, %v1079_v32  ;;  %1530 = vperm.xlu1 %1831, %v1324_v8   ;;  %1403 = vperm.xlu0 %1830, %v1265_v13   ;;  %v1306_v1 = vmul.f32 %v1264_v26, %v2690_v49  ;;  %v1245_v44 = vld [vmem:[%s2633_s25 + $0x70] sm:$0xff] }
 0x208   : > { %1864 = vrsqrt.f32 %v1206_v61  ;;  %v1205_v40 = vadd.f32 1e-05, %v1184_v62  ;;  %v1145_v51 = vmul.f32 %v2735_v39, %v2735_v39 }
 0x209   : > { %v1075_v19 = vpop.xlane.xlu1 %1074  ;;  %v1327_v27 = vsub.f32 %v1285_v3, %v1306_v1  ;;  %v957_v15 = vpop.xlane.xlu0 %956  ;;  %v1326_v3 = vsub.f32 %v1284_v21, %v1305_v0 }
 0x20a   : > { %v1861_v4 = vpop.eup %1860  ;;  %1866 = vrsqrt.f32 %v1205_v40  ;;  %v1166_v25 = vsub.f32 %v1124_v35, %v1145_v51  ;;  %v1123_v9 = vmul.f32 0.0051020407, %v1075_v19  ;;  %v2745_v49 = vmul.f32 0.0051020407, %v957_v15  ;;  %v1287_v51 = vld [vmem:[%s2643_s28 + $0x70] sm:$0xff] }
 0x20b   : > { %1388 = vperm.xlu1 %1831, %v1262_v43   ;;  %1545 = vperm.xlu0 %1830, %v1327_v27   ;;  %v1267_v58 = vmul.f32 %v1861_v4, %v1246_v52  ;;  %v1307_v15 = vmul.f32 %v1265_v13, %v2694_v46  ;;  %v1286_v4 = vld [vmem:[%s2643_s28 + $0x68] sm:$0xff] }
 0x20c   : > { %v1863_v47 = vpop.eup %1862  ;;  %v1187_v32 = vmax.f32 %v1166_v25, 0.0  ;;  %v1165_v8 = vsub.f32 %v1123_v9, %v1144_v42  ;;  %v1146_v61 = vmul.f32 %v2745_v49, %v2745_v49  ;;  %v1248_v25 = vld [vmem:[%s2633_s25 + $0x88] sm:$0xff]  ;;  %v1247_v9 = vld [vmem:[%s2633_s25 + $0x80] sm:$0xff] }
 0x20d   : > { %v1083_v62 = vpop.xlane.xlu1 %1082  ;;  %v1266_v53 = vmul.f32 %v1863_v47, %v1245_v44  ;;  %v1328_v44 = vsub.f32 %v1286_v4, %v1307_v15 }
 0x20e   : > { %v1208_v35 = vadd.f32 1e-05, %v1187_v32  ;;  %v1186_v1 = vmax.f32 %v1165_v8, 0.0  ;;  %v1125_v40 = vmul.f32 0.0051020407, %v1083_v62  ;;  %v1289_v8 = vld [vmem:[%s2643_s28 + $0x80] sm:$0xff] }
 0x20f   : > { %1540 = vperm.xlu1 %1831, %v1326_v3   ;;  %1413 = vperm.xlu0 %1830, %v1267_v58   ;;  %v1308_v43 = vmul.f32 %v1266_v53, %v2705_v16  ;;  %v1288_v62 = vld [vmem:[%s2643_s28 + $0x78] sm:$0xff] }
 0x210   : > { %1868 = vrsqrt.f32 %v1208_v35  ;;  %v1207_v42 = vadd.f32 1e-05, %v1186_v1  ;;  %v1167_v19 = vsub.f32 %v1125_v40, %v1146_v61  ;;  %v1309_v61 = vmul.f32 %v1267_v58, %v2707_v45  ;;  %v1250_v3 = vld [vmem:[%s2633_s25 + $0x98] sm:$0xff]  ;;  %v1249_v35 = vld [vmem:[%s2633_s25 + $0x90] sm:$0xff] }
 0x211   : > { %v1329_v27 = vsub.f32 %v1287_v51, %v1308_v43 }
 0x212   : > { %v1865_v21 = vpop.eup %1864  ;;  %1870 = vrsqrt.f32 %v1207_v42  ;;  %v1188_v0 = vmax.f32 %v1167_v19, 0.0  ;;  %v1330_v40 = vsub.f32 %v1288_v62, %v1309_v61  ;;  %v1291_v42 = vld [vmem:[%s2643_s28 + $0x90] sm:$0xff]  ;;  %v1251_v19 = vld [vmem:[%s2633_s25 + $0xa0] sm:$0xff] }
 0x213   : > { %1398 = vperm.xlu1 %1831, %v1264_v26   ;;  %1555 = vperm.xlu0 %1830, %v1329_v27   ;;  %v1269_v47 = vmul.f32 %v1865_v21, %v1248_v25  ;;  %v1290_v21 = vld [vmem:[%s2643_s28 + $0x88] sm:$0xff] }
 0x214   : > { %v1867_v52 = vpop.eup %1866  ;;  %v1209_v16 = vadd.f32 1e-05, %v1188_v0 }
 0x215   : > { %v1268_v32 = vmul.f32 %v1867_v52, %v1247_v9  ;;  %v1311_v27 = vmul.f32 %v1269_v47, %v2721_v18  ;;  %v1292_v9 = vld [vmem:[%s2643_s28 + $0x98] sm:$0xff] }
 0x216   : > { %1872 = vrsqrt.f32 %v1209_v16 }
 0x217   : > { %1550 = vperm.xlu1 %1831, %v1328_v44   ;;  %1423 = vperm.xlu0 %1830, %v1269_v47   ;;  %v1310_v46 = vmul.f32 %v1268_v32, %v2719_v17  ;;  %v1332_v4 = vsub.f32 %v1290_v21, %v1311_v27 }
 0x219   : > { %v1331_v13 = vsub.f32 %v1289_v8, %v1310_v46 }
 0x21a   : > { %v1869_v26 = vpop.eup %1868 }
 0x21b   : > { %1408 = vperm.xlu1 %1831, %v1266_v53   ;;  %1565 = vperm.xlu0 %1830, %v1331_v13   ;;  %v1271_v51 = vmul.f32 %v1869_v26, %v1250_v3  ;;  %v1293_v53 = vld [vmem:[%s2643_s28 + $0xa0] sm:$0xff] }
 0x21c   : > { %v1871_v1 = vpop.eup %1870 }
 0x21d   : > { %v1270_v43 = vmul.f32 %v1871_v1, %v1249_v35 }
 0x21f   : > { %1560 = vperm.xlu1 %1831, %v1330_v40   ;;  %1433 = vperm.xlu0 %1830, %v1271_v51   ;;  %v1312_v17 = vmul.f32 %v1270_v43, %v2733_v56  ;;  %v1313_v56 = vmul.f32 %v1271_v51, %v2735_v39 }
 0x220   : > { %v1873_v45 = vpop.eup %1872 }
 0x221   : > { %v1333_v58 = vsub.f32 %v1291_v42, %v1312_v17  ;;  %v1272_v15 = vmul.f32 %v1873_v45, %v1251_v19  ;;  %v1334_v52 = vsub.f32 %v1292_v9, %v1313_v56 }
 0x223   : > { %1418 = vperm.xlu1 %1831, %v1268_v32   ;;  %1575 = vperm.xlu0 %1830, %v1333_v58   ;;  %v1314_v0 = vmul.f32 %v1272_v15, %v2745_v49 }
 0x225   : > { %v1335_v25 = vsub.f32 %v1293_v53, %v1314_v0 }
 0x227   : > { %1570 = vperm.xlu1 %1831, %v1332_v4   ;;  %1585 = vperm.xlu0 %1830, %v1335_v25  }
 0x22b   : > { %1428 = vperm.xlu1 %1831, %v1270_v43  }
 0x22f   : > { %1438 = vperm.xlu1 %1831, %v1272_v15  }
 0x233   : > { %1580 = vperm.xlu1 %1831, %v1334_v52  }
 0x250   : > { %v1339_v18 = vpop.permute.xlu0 %1338 }
 0x251   : > { %v1441_v16 = vmul.f32 %v1339_v18, %v2283_v7  ;;  %v1442_v44 = vmul.f32 %v1339_v18, %v2285_v10 }
 0x254   : > { %v1486_v39 = vpop.permute.xlu0 %1485 }
 0x255   : > { %v1588_v49 = vadd.f32 %v1486_v39, %v1441_v16  ;;  %v1589_v47 = vadd.f32 %v1486_v39, %v1442_v44 }
 0x256   : > { %v1344_v32 = vpop.permute.xlu1 %1343 }
 0x257   : > { %1630 = vst [vmem:[%s2778_s6] sm:$0xff] %v1588_v49  ;;  %1631 = vst.msk [vmem:[%s2778_s6 + $0x8] sm:$0xff] %vm873_vm1, %v1589_v47  ;;  %v1443_v7 = vmul.f32 %v1344_v32, %v2287_v12  ;;  %v1444_v10 = vmul.f32 %v1344_v32, %v2289_v14 }
 0x25a   : > { %v1491_v8 = vpop.permute.xlu1 %1490 }
 0x25b   : > { %v1590_v46 = vadd.f32 %v1491_v8, %v1443_v7  ;;  %v1591_v13 = vadd.f32 %v1491_v8, %v1444_v10 }
 0x25d   : > { %1632 = vst [vmem:[%s2778_s6 + $0x10] sm:$0xff] %v1590_v46  ;;  %1633 = vst.msk [vmem:[%s2778_s6 + $0x18] sm:$0xff] %vm873_vm1, %v1591_v13 }
 0x25e   : > { %v1349_v61 = vpop.permute.xlu1 %1348 }
 0x25f   : > { %v1445_v26 = vmul.f32 %v1349_v61, %v2311_v28  ;;  %v1446_v62 = vmul.f32 %v1349_v61, %v2314_v31 }
 0x262   : > { %v1354_v3 = vpop.permute.xlu1 %1353  ;;  %v1496_v35 = vpop.permute.xlu0 %1495 }
 0x263   : > { %v1592_v12 = vadd.f32 %v1496_v35, %v1445_v26  ;;  %v1593_v1 = vadd.f32 %v1496_v35, %v1446_v62  ;;  %v1447_v14 = vmul.f32 %v1354_v3, %v2317_v34  ;;  %v1448_v40 = vmul.f32 %v1354_v3, %v2321_v37 }
 0x265   : > { %1634 = vst [vmem:[%s2778_s6 + $0x20] sm:$0xff] %v1592_v12  ;;  %1635 = vst.msk [vmem:[%s2778_s6 + $0x28] sm:$0xff] %vm873_vm1, %v1593_v1 }
 0x266   : > { %v1501_v51 = vpop.permute.xlu1 %1500 }
 0x267   : > { %v1594_v43 = vadd.f32 %v1501_v51, %v1447_v14  ;;  %v1595_v42 = vadd.f32 %v1501_v51, %v1448_v40 }
 0x269   : > { %1636 = vst [vmem:[%s2778_s6 + $0x30] sm:$0xff] %v1594_v43  ;;  %1637 = vst.msk [vmem:[%s2778_s6 + $0x38] sm:$0xff] %vm873_vm1, %v1595_v42 }
 0x26a   : > { %v1359_v28 = vpop.permute.xlu1 %1358  ;;  %v1506_v19 = vpop.permute.xlu0 %1505 }
 0x26b   : > { %v1449_v31 = vmul.f32 %v1359_v28, %v2343_v50  ;;  %v1450_v34 = vmul.f32 %v1359_v28, %v2346_v54 }
 0x26d   : > { %v1596_v17 = vadd.f32 %v1506_v19, %v1449_v31  ;;  %v1597_v37 = vadd.f32 %v1506_v19, %v1450_v34 }
 0x26e   : > { %v1364_v45 = vpop.permute.xlu1 %1363 }
 0x26f   : > { %1638 = vst [vmem:[%s2778_s6 + $0x40] sm:$0xff] %v1596_v17  ;;  %1639 = vst.msk [vmem:[%s2778_s6 + $0x48] sm:$0xff] %vm873_vm1, %v1597_v37  ;;  %v1451_v58 = vmul.f32 %v1364_v45, %v2350_v57  ;;  %v1452_v27 = vmul.f32 %v1364_v45, %v2355_v60  ;;  %v2916_v45 = vld [vmem:[#allocation3_spill] sm:$0xff] }
 0x272   : > { %v1511_v15 = vpop.permute.xlu1 %1510  ;;  %v1516_v21 = vpop.permute.xlu0 %1515 }
 0x273   : > { %v1598_v53 = vadd.f32 %v1511_v15, %v1451_v58  ;;  %v1599_v0 = vadd.f32 %v1511_v15, %v1452_v27 }
 0x275   : > { %1640 = vst [vmem:[%s2778_s6 + $0x50] sm:$0xff] %v1598_v53  ;;  %1641 = vst.msk [vmem:[%s2778_s6 + $0x58] sm:$0xff] %vm873_vm1, %v1599_v0 }
 0x276   : > { %v1369_v50 = vpop.permute.xlu1 %1368  ;;  %v1384_v54 = vpop.permute.xlu0 %1383 }
 0x277   : > { %v1453_v4 = vmul.f32 %v1369_v50, %v2379_v22  ;;  %v1454_v25 = vmul.f32 %v1369_v50, %v2384_v29 }
 0x279   : > { %v1600_v57 = vadd.f32 %v1516_v21, %v1453_v4  ;;  %v1601_v56 = vadd.f32 %v1516_v21, %v1454_v25  ;;  %v2918_v4 = vld [vmem:[#allocation5_spill] sm:$0xff] }
 0x27a   : > { %v1374_v9 = vpop.permute.xlu1 %1373  ;;  %v1526_v60 = vpop.permute.xlu0 %1525 }
 0x27b   : > { %1642 = vst [vmem:[%s2778_s6 + $0x60] sm:$0xff] %v1600_v57  ;;  %1643 = vst.msk [vmem:[%s2778_s6 + $0x68] sm:$0xff] %vm873_vm1, %v1601_v56  ;;  %v1455_v52 = vmul.f32 %v1374_v9, %v2388_v33  ;;  %v1456_v18 = vmul.f32 %v1374_v9, %v2391_v2  ;;  %v1459_v33 = vmul.f32 %v1384_v54, %v2424_v63  ;;  %v2919_v56 = vld [vmem:[#allocation6_spill] sm:$0xff] }
 0x27c   : > { %v1460_v2 = vmul.f32 %v1384_v54, %v2427_v11 }
 0x27e   : > { %v1521_v16 = vpop.permute.xlu1 %1520  ;;  %v1394_v44 = vpop.permute.xlu0 %1393 }
 0x27f   : > { %v1602_v39 = vadd.f32 %v1521_v16, %v1455_v52  ;;  %v1603_v49 = vadd.f32 %v1521_v16, %v1456_v18  ;;  %v1463_v26 = vmul.f32 %v1394_v44, %v2460_v5  ;;  %v1464_v62 = vmul.f32 %v1394_v44, %v2463_v48 }
 0x281   : > { %1644 = vst [vmem:[%s2778_s6 + $0x70] sm:$0xff] %v1602_v39  ;;  %1645 = vst.msk [vmem:[%s2778_s6 + $0x78] sm:$0xff] %vm873_vm1, %v1603_v49 }
 0x282   : > { %v1379_v22 = vpop.permute.xlu1 %1378  ;;  %v1536_v29 = vpop.permute.xlu0 %1535 }
 0x283   : > { %v1457_v47 = vmul.f32 %v1379_v22, %v2418_v55  ;;  %v1458_v32 = vmul.f32 %v1379_v22, %v2421_v59 }
 0x285   : > { %v1604_v7 = vadd.f32 %v1526_v60, %v1457_v47  ;;  %v1605_v10 = vadd.f32 %v1526_v60, %v1458_v32  ;;  %v2920_v60 = vld [vmem:[#allocation7_spill] sm:$0xff]  ;;  %v2921_v47 = vld [vmem:[#allocation8_spill] sm:$0xff] }
 0x286   : > { %v1531_v8 = vpop.permute.xlu1 %1530  ;;  %v1404_v46 = vpop.permute.xlu0 %1403 }
 0x287   : > { %1646 = vst [vmem:[%s2778_s6 + $0x80] sm:$0xff] %v1604_v7  ;;  %1647 = vst.msk [vmem:[%s2778_s6 + $0x88] sm:$0xff] %vm873_vm1, %v1605_v10  ;;  %v1606_v13 = vadd.f32 %v1531_v8, %v1459_v33  ;;  %v1607_v61 = vadd.f32 %v1531_v8, %v1460_v2  ;;  %v1467_v51 = vmul.f32 %v1404_v46, %v2496_v30  ;;  %v2922_v33 = vld [vmem:[#allocation9_spill] sm:$0xff] }
 0x288   : > { %v1468_v43 = vmul.f32 %v1404_v46, %v2499_v38  ;;  %v2915_v38 = vld [vmem:[#allocation2_spill] sm:$0xff]  ;;  %v2923_v46 = vld [vmem:[#allocation12_spill] sm:$0xff] }
 0x289   : > { %1648 = vst [vmem:[%s2778_s6 + $0x90] sm:$0xff] %v1606_v13  ;;  %1649 = vst.msk [vmem:[%s2778_s6 + $0x98] sm:$0xff] %vm873_vm1, %v1607_v61  ;;  %v2924_v61 = vld [vmem:[#allocation13_spill] sm:$0xff] }
 0x28a   : > { %v1389_v55 = vpop.permute.xlu1 %1388  ;;  %v1546_v59 = vpop.permute.xlu0 %1545 }
 0x28b   : > { %v1461_v63 = vmul.f32 %v1389_v55, %v2454_v36  ;;  %v1462_v11 = vmul.f32 %v1389_v55, %v2457_v41 }
 0x28d   : > { %v1608_v3 = vadd.f32 %v1536_v29, %v1461_v63  ;;  %v1609_v35 = vadd.f32 %v1536_v29, %v1462_v11  ;;  %v2925_v63 = vld [vmem:[#allocation10_spill] sm:$0xff] }
 0x28e   : > { %v1541_v12 = vpop.permute.xlu1 %1540  ;;  %v1414_v1 = vpop.permute.xlu0 %1413 }
 0x28f   : > { %1650 = vst [vmem:[%s2778_s6 + $0xa0] sm:$0xff] %v1608_v3  ;;  %1651 = vst.msk [vmem:[%s2778_s6 + $0xa8] sm:$0xff] %vm873_vm1, %v1609_v35  ;;  %v1610_v14 = vadd.f32 %v1541_v12, %v1463_v26  ;;  %v1611_v40 = vadd.f32 %v1541_v12, %v1464_v62  ;;  %v1471_v37 = vmul.f32 %v1414_v1, %v2915_v38  ;;  %v2926_v26 = vld [vmem:[#allocation11_spill] sm:$0xff] }
 0x290   : > { %v1472_v58 = vmul.f32 %v1414_v1, %v2916_v45 }
 0x291   : > { %1652 = vst [vmem:[%s2778_s6 + $0xb0] sm:$0xff] %v1610_v14  ;;  %1653 = vst.msk [vmem:[%s2778_s6 + $0xb8] sm:$0xff] %vm873_vm1, %v1611_v40 }
 0x292   : > { %v1399_v36 = vpop.permute.xlu1 %1398  ;;  %v1556_v41 = vpop.permute.xlu0 %1555 }
 0x293   : > { %v1465_v5 = vmul.f32 %v1399_v36, %v2490_v24  ;;  %v1466_v48 = vmul.f32 %v1399_v36, %v2493_v23 }
 0x295   : > { %v1612_v42 = vadd.f32 %v1546_v59, %v1465_v5  ;;  %v1613_v28 = vadd.f32 %v1546_v59, %v1466_v48 }
 0x296   : > { %v1551_v31 = vpop.permute.xlu1 %1550  ;;  %v1424_v17 = vpop.permute.xlu0 %1423 }
 0x297   : > { %1654 = vst [vmem:[%s2778_s6 + $0xc0] sm:$0xff] %v1612_v42  ;;  %1655 = vst.msk [vmem:[%s2778_s6 + $0xc8] sm:$0xff] %vm873_vm1, %v1613_v28  ;;  %v1614_v34 = vadd.f32 %v1551_v31, %v1467_v51  ;;  %v1615_v19 = vadd.f32 %v1551_v31, %v1468_v43  ;;  %v1475_v9 = vmul.f32 %v1424_v17, %v2919_v56 }
 0x298   : > { %v1476_v52 = vmul.f32 %v1424_v17, %v2920_v60 }
 0x299   : > { %1656 = vst [vmem:[%s2778_s6 + $0xd0] sm:$0xff] %v1614_v34  ;;  %1657 = vst.msk [vmem:[%s2778_s6 + $0xd8] sm:$0xff] %vm873_vm1, %v1615_v19 }
 0x29a   : > { %v1409_v24 = vpop.permute.xlu1 %1408  ;;  %v1566_v21 = vpop.permute.xlu0 %1565 }
 0x29b   : > { %v1469_v23 = vmul.f32 %v1409_v24, %v2522_v6  ;;  %v1470_v30 = vmul.f32 %v1409_v24, %v2525_v20  ;;  %v2917_v20 = vld [vmem:[#allocation4_spill] sm:$0xff] }
 0x29d   : > { %v1616_v27 = vadd.f32 %v1556_v41, %v1469_v23  ;;  %v1617_v15 = vadd.f32 %v1556_v41, %v1470_v30 }
 0x29e   : > { %v1561_v53 = vpop.permute.xlu1 %1560  ;;  %v1434_v57 = vpop.permute.xlu0 %1433 }
 0x29f   : > { %1658 = vst [vmem:[%s2778_s6 + $0xe0] sm:$0xff] %v1616_v27  ;;  %1659 = vst.msk [vmem:[%s2778_s6 + $0xe8] sm:$0xff] %vm873_vm1, %v1617_v15  ;;  %v1618_v0 = vadd.f32 %v1561_v53, %v1471_v37  ;;  %v1619_v50 = vadd.f32 %v1561_v53, %v1472_v58  ;;  %v1479_v11 = vmul.f32 %v1434_v57, %v2925_v63 }
 0x2a0   : > { %v1480_v62 = vmul.f32 %v1434_v57, %v2926_v26 }
 0x2a1   : > { %1660 = vst [vmem:[%s2778_s6 + $0xf0] sm:$0xff] %v1618_v0  ;;  %1661 = vst.msk [vmem:[%s2778_s6 + $0xf8] sm:$0xff] %vm873_vm1, %v1619_v50 }
 0x2a2   : > { %v1419_v6 = vpop.permute.xlu1 %1418  ;;  %v1576_v22 = vpop.permute.xlu0 %1575 }
 0x2a3   : > { %v1473_v54 = vmul.f32 %v1419_v6, %v2917_v20  ;;  %v1474_v25 = vmul.f32 %v1419_v6, %v2918_v4 }
 0x2a5   : > { %v1620_v18 = vadd.f32 %v1566_v21, %v1473_v54  ;;  %v1621_v16 = vadd.f32 %v1566_v21, %v1474_v25 }
 0x2a6   : > { %v1571_v44 = vpop.permute.xlu1 %1570  ;;  %v1586_v59 = vpop.permute.xlu0 %1585 }
 0x2a7   : > { %1662 = vst [vmem:[%s2778_s6 + $0x100] sm:$0xff] %v1620_v18  ;;  %1663 = vst.msk [vmem:[%s2778_s6 + $0x108] sm:$0xff] %vm873_vm1, %v1621_v16  ;;  %v1622_v39 = vadd.f32 %v1571_v44, %v1475_v9  ;;  %v1623_v49 = vadd.f32 %v1571_v44, %v1476_v52 }
 0x2a9   : > { %1664 = vst [vmem:[%s2778_s6 + $0x110] sm:$0xff] %v1622_v39  ;;  %1665 = vst.msk [vmem:[%s2778_s6 + $0x118] sm:$0xff] %vm873_vm1, %v1623_v49 }
 0x2aa   : > { %v1429_v29 = vpop.permute.xlu1 %1428 }
 0x2ab   : > { %v1477_v32 = vmul.f32 %v1429_v29, %v2921_v47  ;;  %v1478_v2 = vmul.f32 %v1429_v29, %v2922_v33 }
 0x2ad   : > { %v1624_v7 = vadd.f32 %v1576_v22, %v1477_v32  ;;  %v1625_v10 = vadd.f32 %v1576_v22, %v1478_v2 }
 0x2ae   : > { %v1439_v8 = vpop.permute.xlu1 %1438 }
 0x2af   : > { %1666 = vst [vmem:[%s2778_s6 + $0x120] sm:$0xff] %v1624_v7  ;;  %1667 = vst.msk [vmem:[%s2778_s6 + $0x128] sm:$0xff] %vm873_vm1, %v1625_v10  ;;  %v1481_v13 = vmul.f32 %v1439_v8, %v2923_v46  ;;  %v1482_v55 = vmul.f32 %v1439_v8, %v2924_v61 }
 0x2b1   : > { %v1628_v3 = vadd.f32 %v1586_v59, %v1481_v13  ;;  %v1629_v35 = vadd.f32 %v1586_v59, %v1482_v55 }
 0x2b2   : > { %v1581_v12 = vpop.permute.xlu1 %1580 }
 0x2b3   : > { %1670 = vst [vmem:[%s2778_s6 + $0x140] sm:$0xff] %v1628_v3  ;;  %1671 = vst.msk [vmem:[%s2778_s6 + $0x148] sm:$0xff] %vm873_vm1, %v1629_v35  ;;  %v1626_v1 = vadd.f32 %v1581_v12, %v1479_v11  ;;  %v1627_v14 = vadd.f32 %v1581_v12, %v1480_v62 }
 0x2b5   : > { %1668 = vst [vmem:[%s2778_s6 + $0x130] sm:$0xff] %v1626_v1  ;;  %1669 = vst.msk [vmem:[%s2778_s6 + $0x138] sm:$0xff] %vm873_vm1, %v1627_v14 }
 0x2b6 PF: > { %s14_s15 = sadd.s32 1, %s1880_s15  }
 0x2b7   : > { %p11_p4 = scmp.ge.s32.totalorder %s14_s15, 4  }
 0x2b9   :  { %13 = sbr.rel (!%p11_p4) target bundleno = 1 (0x1), region = 72 }

</bundles_post_ra>
